<compile_context>
chip_gen: v6e
topology: v6e:2x2x1
jax: 0.10.0
libtpu: 0.0.40
codegen_flags: <defaults>
</compile_context>

<pallas_src>
import functools
import math

import jax
import jax.numpy as jnp
from jax.experimental import pallas as pl
from jax.experimental.pallas import tpu as pltpu


def round_up(a, b):
    return (a + b - 1) // b * b


def _vmem_budgets():
    """Per-generation VMEM limits: 128 MiB chips (v5e/v6e) vs 64 MiB (v7x)."""
    cap = 64 * 1024 * 1024
    try:
        cap = int(pltpu.get_tpu_info().vmem_capacity_bytes)
    except Exception:
        pass
    if cap >= 128 * 1024 * 1024:
        return 96 * 1024 * 1024, 48 * 1024 * 1024
    return 40 * 1024 * 1024, 20 * 1024 * 1024


VMEM_LIMIT, MATMUL_VMEM_BUDGET = _vmem_budgets()


# ----------------------------------------------------------------------------
# Fused matmul kernels:  y = act(x @ w + shift)   (bf16 MXU operands, f32 acc)
# ----------------------------------------------------------------------------
def _apply_act(r, act):
    if act == "relu":
        return jnp.maximum(r, 0.0)
    if act == "sigmoid":
        return jax.nn.sigmoid(r)       # exp/recip on the EUP
    return r


def _matmul_fused_k1_kernel(x_ref, w_ref, b_ref, o_ref, *, act):
    # whole-K specialization: no accumulator scratch, no zero-init, no '+='.
    r = jnp.dot(x_ref[...], w_ref[...], preferred_element_type=jnp.float32)
    o_ref[...] = _apply_act(r + b_ref[...], act).astype(o_ref.dtype)


def _matmul_fused_kernel(x_ref, w_ref, b_ref, o_ref, acc_ref, *, act):
    @pl.when(pl.program_id(2) == 0)
    def _():
        acc_ref[...] = jnp.zeros_like(acc_ref)

    acc_ref[...] += jnp.dot(x_ref[...], w_ref[...],
                            preferred_element_type=jnp.float32)

    @pl.when(pl.program_id(2) == pl.num_programs(2) - 1)
    def _():
        o_ref[...] = _apply_act(acc_ref[...] + b_ref[...], act).astype(o_ref.dtype)


def _pick_tm(M):
    """Largest tm <= 1024 (multiple of 8) dividing M; pad only when unavoidable."""
    if M % 8 == 0:
        t = min(1024, M)
        t -= t % 8
        while t >= 8:
            if M % t == 0:
                return t, M
            t -= 8
        return 8, M
    Mp8 = round_up(M, 8)
    if Mp8 <= 1024:
        return Mp8, Mp8
    return 512, round_up(M, 512)


def _largest_tile(Np, cap):
    """Largest multiple of 128 <= cap that divides Np (Np is a multiple of 128)."""
    t = min(Np, max(cap, 128))
    t -= t % 128
    while t > 128:
        if Np % t == 0:
            return t
        t -= 128
    return 128


def _matmul_tiles(M, K, Np):
    tm, Mp = _pick_tm(M)

    # lane-dense output tiles; extra-wide weight tiles for tiny-M (fc) layers so
    # the big fc_dec weight streams in few grid steps (per-step overhead ~0.35us).
    tn = _largest_tile(Np, 4096 if M <= 64 else 512)

    def vmem(tm_, tk_, tn_):            # bf16 dbl-buffered inputs, f32 acc + out
        return 4 * tk_ * (tm_ + tn_) + 12 * tm_ * tn_

    tk = K                              # prefer whole-K single-shot reduction
    while tn > 128 and vmem(tm, tk, tn) > MATMUL_VMEM_BUDGET:
        tn = _largest_tile(Np, tn - 128)
    if vmem(tm, tk, tn) > MATMUL_VMEM_BUDGET:
        for t in (2048, 1024, 512, 256, 128):   # >=256-deep tiles preferred (2x256 MXU)
            if K % t == 0 and vmem(tm, t, tn) <= MATMUL_VMEM_BUDGET:
                tk = t
                break
    while vmem(tm, tk, tn) > MATMUL_VMEM_BUDGET and tm % 16 == 0 and tm > 16:
        tm //= 2

    # guarantee >=2 blocks on a parallel axis so v7x's 2nd TensorCore gets work
    if Mp == tm and Np == tn and tn >= 512 and tn % 256 == 0:
        tn //= 2
    return tm, tk, tn, Mp


def matmul_fused(x, w, shift, n_out, act="none", out_dtype=jnp.bfloat16):
    """act((x @ w) + shift).  x:(M,K); w:(Kp,Np) bf16 pre-packed
    (Kp=round_up(K,16), Np=round_up(N,128)); shift:(1,Np) f32.
    Returns (M, n_out) out_dtype."""
    M, K = x.shape
    Kp, Np = w.shape
    x = x.astype(jnp.bfloat16)
    if Kp != K:                         # only first conv / classifier conv hit this
        x = jnp.pad(x, ((0, 0), (0, Kp - K)))
        K = Kp

    tm, tk, tn, Mp = _matmul_tiles(M, K, Np)
    if Mp != M:
        x = jnp.pad(x, ((0, Mp - M), (0, 0)))

    ksteps = K // tk
    if ksteps == 1:
        out = pl.pallas_call(
            functools.partial(_matmul_fused_k1_kernel, act=act),
            out_shape=jax.ShapeDtypeStruct((Mp, Np), out_dtype),
            grid_spec=pltpu.PrefetchScalarGridSpec(
                num_scalar_prefetch=0,
                grid=(Mp // tm, Np // tn),
                in_specs=[
                    pl.BlockSpec((tm, K), lambda i, j: (i, 0)),
                    pl.BlockSpec((K, tn), lambda i, j: (0, j)),
                    pl.BlockSpec((1, tn), lambda i, j: (0, j)),
                ],
                out_specs=pl.BlockSpec((tm, tn), lambda i, j: (i, j)),
            ),
            compiler_params=pltpu.CompilerParams(
                dimension_semantics=("parallel", "parallel"),
                vmem_limit_bytes=VMEM_LIMIT),
        )(x, w, shift)
    else:
        out = pl.pallas_call(
            functools.partial(_matmul_fused_kernel, act=act),
            out_shape=jax.ShapeDtypeStruct((Mp, Np), out_dtype),
            grid_spec=pltpu.PrefetchScalarGridSpec(
                num_scalar_prefetch=0,
                grid=(Mp // tm, Np // tn, ksteps),
                in_specs=[
                    pl.BlockSpec((tm, tk), lambda i, j, k: (i, k)),
                    pl.BlockSpec((tk, tn), lambda i, j, k: (k, j)),
                    pl.BlockSpec((1, tn), lambda i, j, k: (0, j)),
                ],
                out_specs=pl.BlockSpec((tm, tn), lambda i, j, k: (i, j)),
                scratch_shapes=[pltpu.VMEM((tm, tn), jnp.float32)],
            ),
            compiler_params=pltpu.CompilerParams(
                dimension_semantics=("parallel", "parallel", "arbitrary"),
                vmem_limit_bytes=VMEM_LIMIT),
        )(x, w, shift)
    if Mp != M or Np != n_out:
        out = out[:M, :n_out]
    return out


# ----------------------------------------------------------------------------
# Row-tiled elementwise / reduction kernels
# ----------------------------------------------------------------------------
def _pick_rows(m, bytes_per_row, cap=1024, budget=2 * 1024 * 1024):
    while cap > 8 and cap * bytes_per_row > budget:
        cap //= 2
    mp8 = round_up(m, 8)
    if mp8 <= cap:
        return mp8, mp8
    return cap, round_up(m, cap)


def _add_relu_kernel(a_ref, b_ref, o_ref):
    s = a_ref[...].astype(jnp.float32) + b_ref[...].astype(jnp.float32)
    o_ref[...] = jnp.maximum(s, 0.0).astype(o_ref.dtype)


@jax.jit
def add_relu(a, b):
    """Residual add + ReLU (f32 add, bf16 out), row-tiled so it pipelines."""
    B, H, W, C = a.shape
    M = B * H * W
    a2 = a.reshape(M, C)
    b2 = b.reshape(M, C)
    tr, Mp = _pick_rows(M, C * 4)
    if Mp != M:
        a2 = jnp.pad(a2, ((0, Mp - M), (0, 0)))
        b2 = jnp.pad(b2, ((0, Mp - M), (0, 0)))
    out = pl.pallas_call(
        _add_relu_kernel,
        out_shape=jax.ShapeDtypeStruct((Mp, C), jnp.bfloat16),
        grid_spec=pltpu.PrefetchScalarGridSpec(
            num_scalar_prefetch=0,
            grid=(Mp // tr,),
            in_specs=[pl.BlockSpec((tr, C), lambda i: (i, 0)),
                      pl.BlockSpec((tr, C), lambda i: (i, 0))],
            out_specs=pl.BlockSpec((tr, C), lambda i: (i, 0)),
        ),
        compiler_params=pltpu.CompilerParams(
            dimension_semantics=("parallel",),
            vmem_limit_bytes=VMEM_LIMIT),
    )(a2, b2)
    if Mp != M:
        out = out[:M]
    return out.reshape(B, H, W, C)


def _max_reduce_kernel(x_ref, o_ref):
    o_ref[...] = jnp.max(x_ref[...], axis=1)


def extract_patches(x, kh, kw, stride, pad, pad_value=0.0):
    """im2col (pure data movement): (B,H,W,C) -> (B,OH,OW,kh*kw,C)."""
    # TODO(synk): the kh*kw-times patch tensor is still materialized in HBM; reading
    # shifted windows directly via a custom index_map / manual DMA would remove it.
    B, H, W, C = x.shape
    if pad:
        x = jnp.pad(x, ((0, 0), (pad, pad), (pad, pad), (0, 0)),
                    constant_values=pad_value)
    Hp, Wp = H + 2 * pad, W + 2 * pad
    OH = (Hp - kh) // stride + 1
    OW = (Wp - kw) // stride + 1
    cols = [x[:, i:i + stride * OH:stride, j:j + stride * OW:stride, :]
            for i in range(kh) for j in range(kw)]
    return jnp.stack(cols, axis=3), (B, OH, OW)


@jax.jit
def maxpool_3x3_s2(x):
    xb = x.astype(jnp.bfloat16)          # bf16 patches: half the HBM traffic
    patches, (B, OH, OW) = extract_patches(xb, 3, 3, 2, 1, pad_value=-jnp.inf)
    KK, C = patches.shape[3], patches.shape[4]
    M = B * OH * OW
    p = patches.reshape(M, KK, C)
    tr, Mp = _pick_rows(M, KK * C * 2)
    if Mp != M:
        p = jnp.pad(p, ((0, Mp - M), (0, 0), (0, 0)), constant_values=-jnp.inf)
    out = pl.pallas_call(
        _max_reduce_kernel,
        out_shape=jax.ShapeDtypeStruct((Mp, C), jnp.bfloat16),
        grid_spec=pltpu.PrefetchScalarGridSpec(
            num_scalar_prefetch=0,
            grid=(Mp // tr,),
            in_specs=[pl.BlockSpec((tr, KK, C), lambda i: (i, 0, 0))],
            out_specs=pl.BlockSpec((tr, C), lambda i: (i, 0)),
        ),
        compiler_params=pltpu.CompilerParams(
            dimension_semantics=("parallel",),
            vmem_limit_bytes=VMEM_LIMIT),
    )(p)
    if Mp != M:
        out = out[:M]
    return out.reshape(B, OH, OW, C)


def _avgpool_kernel(x_ref, o_ref, *, inv_count):
    @pl.when(pl.program_id(0) == 0)
    def _():
        o_ref[...] = jnp.zeros_like(o_ref)
    o_ref[...] += jnp.sum(x_ref[...].astype(jnp.float32), axis=1) * inv_count


@jax.jit
def global_avg_pool(x):
    """AdaptiveAvgPool2d((1,1)) + flatten: (B,H,W,C) -> (B,C) f32."""
    B, H, W, C = x.shape
    HW = H * W
    xr = x.reshape(B, HW, C)
    chunk = 2048
    while chunk > 8 and B * chunk * C * 4 > 2 * 1024 * 1024:
        chunk //= 2
    chunk = min(chunk, round_up(HW, 8))
    HWp = round_up(HW, chunk)
    if HWp != HW:
        xr = jnp.pad(xr, ((0, 0), (0, HWp - HW), (0, 0)))   # zero pad ok for a sum
    return pl.pallas_call(
        functools.partial(_avgpool_kernel, inv_count=1.0 / HW),
        out_shape=jax.ShapeDtypeStruct((B, C), jnp.float32),
        grid_spec=pltpu.PrefetchScalarGridSpec(
            num_scalar_prefetch=0,
            grid=(HWp // chunk,),
            in_specs=[pl.BlockSpec((B, chunk, C), lambda i: (0, i, 0))],
            out_specs=pl.BlockSpec((B, C), lambda i: (0, 0)),
        ),
        compiler_params=pltpu.CompilerParams(
            dimension_semantics=("arbitrary",),
            vmem_limit_bytes=VMEM_LIMIT),
    )(xr)


# ----------------------------------------------------------------------------
# Fused classifier head: Conv2d(3x3,p=1) + ReLU + global average pool
# ----------------------------------------------------------------------------
def _conv_relu_gap_kernel(x_ref, w_ref, b_ref, o_ref, *, inv_count):
    @pl.when(pl.program_id(1) == 0)
    def _():
        o_ref[...] = jnp.zeros_like(o_ref)
    r = jnp.dot(x_ref[...], w_ref[...], preferred_element_type=jnp.float32)
    r = jnp.maximum(r + b_ref[...], 0.0)
    o_ref[...] += jnp.sum(r, axis=0, keepdims=True)       # broadcast over sublanes
    @pl.when(pl.program_id(1) == pl.num_programs(1) - 1)
    def _():
        o_ref[...] *= inv_count


@functools.partial(jax.jit, static_argnames=("n_out",))
def conv3x3_relu_gap(x, w_packed, shift, *, n_out):
    """Conv2d(k=3,s=1,p=1)+ReLU+AdaptiveAvgPool2d((1,1))+Flatten fused: per-image
    column sums accumulate in VMEM; the full conv feature map never hits HBM."""
    xb = x.astype(jnp.bfloat16)
    patches, (B, OH, OW) = extract_patches(xb, 3, 3, 1, 1)
    pm = patches.reshape(B * OH * OW, -1)
    K = pm.shape[1]
    Kp, Np = w_packed.shape
    if Kp != K:
        pm = jnp.pad(pm, ((0, 0), (0, Kp - K)))
    Mimg = OH * OW
    if Mimg % 8 != 0:                    # unlikely fallback: unfused path
        y = matmul_fused(pm, w_packed, shift, n_out, act="relu",
                         out_dtype=jnp.bfloat16).reshape(B, OH, OW, n_out)
        return global_avg_pool(y)
    tm, _ = _pick_tm(Mimg)
    steps = Mimg // tm
    out = pl.pallas_call(
        functools.partial(_conv_relu_gap_kernel, inv_count=1.0 / Mimg),
        out_shape=jax.ShapeDtypeStruct((B, 8, Np), jnp.float32),
        grid_spec=pltpu.PrefetchScalarGridSpec(
            num_scalar_prefetch=0,
            grid=(B, steps),
            in_specs=[
                pl.BlockSpec((tm, Kp), lambda b, m: (b * steps + m, 0)),
                pl.BlockSpec((Kp, Np), lambda b, m: (0, 0)),
                pl.BlockSpec((1, Np), lambda b, m: (0, 0)),
            ],
            out_specs=pl.BlockSpec((1, 8, Np), lambda b, m: (b, 0, 0)),
        ),
        compiler_params=pltpu.CompilerParams(
            dimension_semantics=("parallel", "arbitrary"),
            vmem_limit_bytes=VMEM_LIMIT),
    )(pm, w_packed, shift)
    return out[:, 0, :n_out]


# ----------------------------------------------------------------------------
# Conv / transposed-conv / linear wrappers (pre-packed bf16 weights)
# ----------------------------------------------------------------------------
@functools.partial(jax.jit, static_argnames=("kh", "kw", "n_out", "stride", "pad", "act"))
def conv2d(x, w_packed, shift, *, kh, kw, n_out, stride, pad, act):
    """NHWC conv via im2col + fused matmul; bf16 in, bf16 out."""
    xb = x.astype(jnp.bfloat16)
    if kh == 1 and kw == 1 and pad == 0:
        if stride > 1:
            xb = xb[:, ::stride, ::stride, :]
        B, OH, OW, C = xb.shape
        pm = xb.reshape(B * OH * OW, C)
    else:
        patches, (B, OH, OW) = extract_patches(xb, kh, kw, stride, pad)
        pm = patches.reshape(B * OH * OW, -1)
    y = matmul_fused(pm, w_packed, shift, n_out, act=act, out_dtype=jnp.bfloat16)
    return y.reshape(B, OH, OW, n_out)


@functools.partial(jax.jit, static_argnames=("n_tot", "act"))
def deconv_s2(x, w_packed, shift, *, n_tot, act):
    """ConvTranspose2d(k=3, s=2, p=1, output_padding=1) via 4-phase (sub-pixel)
    decomposition: one matmul over 2x2 input taps -> 4*Cout interleaved outputs."""
    B, H, W, C = x.shape
    cout = n_tot // 4
    xb = x.astype(jnp.bfloat16)
    xp = jnp.pad(xb, ((0, 0), (0, 1), (0, 1), (0, 0)))
    taps = [xp[:, th:th + H, tw:tw + W, :] for th in range(2) for tw in range(2)]
    pm = jnp.concatenate(taps, axis=-1).reshape(B * H * W, 4 * C)
    y = matmul_fused(pm, w_packed, shift, n_tot, act=act, out_dtype=jnp.bfloat16)
    y = y.reshape(B, H, W, 2, 2, cout).transpose(0, 1, 3, 2, 4, 5)
    return y.reshape(B, 2 * H, 2 * W, cout)


@functools.partial(jax.jit, static_argnames=("n_out", "act", "out_dtype"))
def linear_fused(x, w_packed, shift, *, n_out, act, out_dtype=jnp.bfloat16):
    return matmul_fused(x, w_packed, shift, n_out, act=act, out_dtype=out_dtype)


# ----------------------------------------------------------------------------
# Deterministic parameter construction + one-time weight pre-packing
# ----------------------------------------------------------------------------
class ParamGen:
    def __init__(self, seed=0):
        self.key = jax.random.PRNGKey(seed)

    def normal(self, shape, std=1.0):
        self.key, sub = jax.random.split(self.key)
        return (std * jax.random.normal(sub, shape)).astype(jnp.float32)

    def conv(self, cout, cin, kh, kw):
        return self.normal((cout, cin, kh, kw), std=math.sqrt(2.0 / (cin * kh * kw)))

    def conv_t(self, cin, cout, kh, kw):
        return self.normal((cin, cout, kh, kw), std=math.sqrt(2.0 / (cin * kh * kw)))

    def linear(self, cout, cin):
        return (self.normal((cout, cin), std=math.sqrt(1.0 / cin)),
                self.normal((cout,), std=0.01))


def bn_fold(c, bias=None, eps=1e-5):
    """Eval-mode BatchNorm2d (gamma=1, beta=0, mean=0, var=1) folded with the conv
    bias into per-channel (scale, shift)."""
    gamma = jnp.ones((c,), jnp.float32)
    beta = jnp.zeros((c,), jnp.float32)
    mean = jnp.zeros((c,), jnp.float32)
    var = jnp.ones((c,), jnp.float32)
    scale = gamma / jnp.sqrt(var + eps)
    b = jnp.zeros((c,), jnp.float32) if bias is None else bias
    shift = beta + (b - mean) * scale
    return scale, shift


def _pack_kn(wm, shift, n):
    """Pad a (K,N) f32 weight to (round_up(K,16), round_up(N,128)) and cast bf16."""
    K = wm.shape[0]
    Kp, Np = round_up(K, 16), round_up(n, 128)
    wp = jnp.zeros((Kp, Np), jnp.float32).at[:K, :n].set(wm).astype(jnp.bfloat16)
    sp = jnp.zeros((1, Np), jnp.float32).at[0, :n].set(shift)
    return wp, sp


def pack_conv(w, scale, shift):
    """PyTorch (Cout,Cin,kh,kw) conv weight -> pre-packed (Kp,Np) bf16 with the
    BN/bias scale folded into the columns."""
    Cout, Cin, kh, kw = w.shape
    wm = jnp.transpose(w, (2, 3, 1, 0)).reshape(kh * kw * Cin, Cout) * scale[None, :]
    wp, sp = _pack_kn(wm, shift, Cout)
    return {"w": wp, "shift": sp, "n": Cout, "kh": kh, "kw": kw}


def pack_deconv_s2(w, scale, shift):
    """PyTorch (Cin,Cout,3,3) ConvTranspose2d(s=2,p=1,op=1) weight -> 4-phase packed
    (4*Cin, 4*Cout) matrix: tap x[mh+th, mw+tw] -> output pixel (2mh+dh, 2mw+dw)."""
    Cin, Cout = w.shape[0], w.shape[1]
    assign = {
        (0, 0): [((0, 0), (1, 1))],
        (0, 1): [((0, 0), (1, 2)), ((0, 1), (1, 0))],
        (1, 0): [((0, 0), (2, 1)), ((1, 0), (0, 1))],
        (1, 1): [((0, 0), (2, 2)), ((0, 1), (2, 0)), ((1, 0), (0, 2)), ((1, 1), (0, 0))],
    }
    Wb = jnp.zeros((4, Cin, 4, Cout), jnp.float32)
    for (dh, dw), taps in assign.items():
        p = 2 * dh + dw
        for (th, tw), (ki, kj) in taps:
            Wb = Wb.at[2 * th + tw, :, p, :].set(w[:, :, ki, kj])
    Wb = Wb * scale[None, None, None, :]
    wm = Wb.reshape(4 * Cin, 4 * Cout)
    wp, sp = _pack_kn(wm, jnp.tile(shift, 4), 4 * Cout)
    return {"w": wp, "shift": sp, "n": 4 * Cout}


def pack_linear(w, b):
    out_f, in_f = w.shape
    wp, sp = _pack_kn(w.T, b, out_f)
    return {"w": wp, "shift": sp, "n": out_f}


def build_params(seed=0, num_classes=12):
    pg = ParamGen(seed)

    def conv_bn(cout, cin, kh, kw):               # conv(bias=False) + BN, eval mode
        return pack_conv(pg.conv(cout, cin, kh, kw), *bn_fold(cout))

    # TODO(synk): pretrained ResNet101_Weights.DEFAULT cannot be loaded here; the
    # exact architecture is reproduced with deterministic random weights.
    enc = {"conv1": conv_bn(64, 3, 7, 7)}
    layers = []
    inplanes = 64
    for planes, blocks, stride in [(64, 3, 1), (128, 4, 2), (256, 23, 2), (512, 3, 2)]:
        blks = []
        for b in range(blocks):
            s = stride if b == 0 else 1
            blk = {"stride": s,
                   "conv1": conv_bn(planes, inplanes, 1, 1),
                   "conv2": conv_bn(planes, planes, 3, 3),
                   "conv3": conv_bn(planes * 4, planes, 1, 1)}
            if s != 1 or inplanes != planes * 4:
                blk["down"] = conv_bn(planes * 4, inplanes, 1, 1)
            blks.append(blk)
            inplanes = planes * 4
        layers.append(blks)
    enc["layers"] = layers

    fc_enc = pack_linear(*pg.linear(1024, 2048))            # Linear(2048 -> 1024)
    fc_dec = pack_linear(*pg.linear(512 * 7 * 7, 1024))     # Linear(1024 -> 25088)

    dec = []
    for idx, (ci, co) in enumerate([(512, 256), (256, 128), (128, 64), (64, 32), (32, 3)]):
        w = pg.conv_t(ci, co, 3, 3)
        bias = pg.normal((co,), std=0.01)
        if idx < 4:
            scale, shift = bn_fold(co, bias=bias)
            act = "relu"
        else:
            scale, shift = jnp.ones((co,), jnp.float32), bias
            act = "sigmoid"
        d = pack_deconv_s2(w, scale, shift)
        d["act"] = act
        dec.append(d)

    cls_conv = pack_conv(pg.conv(16, 3, 3, 3), jnp.ones((16,), jnp.float32),
                         pg.normal((16,), std=0.01))
    cls_fc = pack_linear(*pg.linear(num_classes, 16))

    return {"encoder": enc, "fc_enc": fc_enc, "fc_dec": fc_dec,
            "decoder": dec, "cls_conv": cls_conv, "cls_fc": cls_fc}


# ----------------------------------------------------------------------------
# Forward pass
# ----------------------------------------------------------------------------
def _conv(x, pk, *, stride, pad, act):
    return conv2d(x, pk["w"], pk["shift"], kh=pk["kh"], kw=pk["kw"],
                  n_out=pk["n"], stride=stride, pad=pad, act=act)


def bottleneck(x, blk):
    s = blk["stride"]
    out = _conv(x, blk["conv1"], stride=1, pad=0, act="relu")
    out = _conv(out, blk["conv2"], stride=s, pad=1, act="relu")
    out = _conv(out, blk["conv3"], stride=1, pad=0, act="none")
    identity = _conv(x, blk["down"], stride=s, pad=0, act="none") if "down" in blk else x
    return add_relu(out, identity)


def autoencoder_forward(x_nchw, params):
    # layout: input is NCHW (PyTorch convention); transposed once to NHWC.
    x = jnp.transpose(x_nchw, (0, 2, 3, 1)).astype(jnp.float32)
    B = x.shape[0]

    # --- encoder: frozen ResNet-101 backbone (children()[:-2]) ---
    e = params["encoder"]
    x = _conv(x, e["conv1"], stride=2, pad=3, act="relu")
    x = maxpool_3x3_s2(x)
    for layer in e["layers"]:
        for blk in layer:
            x = bottleneck(x, blk)

    # --- AdaptiveAvgPool2d((1,1)) + flatten ---
    feat = global_avg_pool(x)                                      # (B, 2048) f32

    # TODO(synk): nn.Dropout(p=0.5) is stochastic in train mode; modeled as
    # inference-mode identity (torch RNG stream cannot be reproduced).

    latent = linear_fused(feat, params["fc_enc"]["w"], params["fc_enc"]["shift"],
                          n_out=params["fc_enc"]["n"], act="none")  # (B, 1024)
    dec = linear_fused(latent, params["fc_dec"]["w"], params["fc_dec"]["shift"],
                       n_out=params["fc_dec"]["n"], act="none")     # (B, 25088)

    # view(B, 512, 7, 7) (NCHW) -> NHWC
    dec = dec.reshape(B, 512, 7, 7).transpose(0, 2, 3, 1)

    # --- decoder: 5x ConvTranspose2d(k3,s2,p1,op1) [+BN+ReLU]x4, last + Sigmoid ---
    for layer in params["decoder"]:
        dec = deconv_s2(dec, layer["w"], layer["shift"],
                        n_tot=layer["n"], act=layer["act"])

    # --- classifier: Conv2d(3,16,k3,p1)+ReLU+AdaptiveAvgPool2d+Flatten (fused) ---
    cc = params["cls_conv"]
    pooled = conv3x3_relu_gap(dec, cc["w"], cc["shift"], n_out=16)  # (B, 16) f32
    fc = params["cls_fc"]
    return linear_fused(pooled, fc["w"], fc["shift"], n_out=fc["n"], act="none",
                        out_dtype=jnp.float32)                      # (B, num_classes)


if __name__ == "__main__":
    x = jax.random.normal(jax.random.PRNGKey(0), (2, 3, 64, 64), dtype=jnp.float32)
    params = build_params(seed=0, num_classes=12)
    logits = autoencoder_forward(x, params)
    logits = jax.block_until_ready(logits)
    assert logits.shape == (2, 12), logits.shape
    assert bool(jnp.all(jnp.isfinite(logits)))
    print("KERNEL_OK")
</pallas_src>

<mosaic_0001>
module attributes {stable_mosaic.version = 11 : i64} {
  func.func @_matmul_fused_k1_kernel(%arg0: i32, %arg1: i32, %arg2: memref<1024x160xbf16, #tpu.memory_space<vmem>>, %arg3: memref<160x128xbf16, #tpu.memory_space<vmem>>, %arg4: memref<1x128xf32, #tpu.memory_space<vmem>>, %arg5: memref<1024x128xbf16, #tpu.memory_space<vmem>>) attributes {dimension_semantics = [#tpu.dimension_semantics<parallel>, #tpu.dimension_semantics<parallel>], iteration_bounds = array<i64: 2, 1>, scalar_prefetch = 0 : i64, scratch_operands = 0 : i64, tpu.core_type = #tpu.core_type<tc>, window_params = [{transform_indices = @transform_0, window_bounds = array<i64: 1024, 160>}, {transform_indices = @transform_1, window_bounds = array<i64: 160, 128>}, {transform_indices = @transform_2, window_bounds = array<i64: 1, 128>}, {transform_indices = @transform_3, window_bounds = array<i64: 1024, 128>}]} {
    %c0 = arith.constant 0 : index
    %c0_0 = arith.constant 0 : index
    %0 = vector.load %arg2[%c0, %c0_0] : memref<1024x160xbf16, #tpu.memory_space<vmem>>, vector<1024x160xbf16>
    %c0_1 = arith.constant 0 : index
    %c0_2 = arith.constant 0 : index
    %1 = vector.load %arg3[%c0_1, %c0_2] : memref<160x128xbf16, #tpu.memory_space<vmem>>, vector<160x128xbf16>
    %cst = arith.constant dense<0.000000e+00> : vector<1024x128xf32>
    %2 = tpu.matmul %0, %1, %cst {dimension_numbers = #tpu.dot_dimension_numbers<[1], [0], [0], [1], [0, 0, 1, 1], [], []>} : vector<1024x160xbf16>, vector<160x128xbf16>, vector<1024x128xf32> -> vector<1024x128xf32>
    %c0_3 = arith.constant 0 : index
    %c0_4 = arith.constant 0 : index
    %3 = vector.load %arg4[%c0_3, %c0_4] : memref<1x128xf32, #tpu.memory_space<vmem>>, vector<1x128xf32>
    %4 = vector.broadcast %3 : vector<1x128xf32> to vector<1024x128xf32>
    %5 = arith.addf %2, %4 : vector<1024x128xf32>
    %cst_5 = arith.constant 0.000000e+00 : f32
    %6 = vector.broadcast %cst_5 : f32 to vector<1024x128xf32>
    %7 = arith.maximumf %5, %6 : vector<1024x128xf32>
    %8 = arith.truncf %7 : vector<1024x128xf32> to vector<1024x128xbf16>
    %c0_6 = arith.constant 0 : index
    %c0_7 = arith.constant 0 : index
    %9 = vector.load %arg5[%c0_6, %c0_7] : memref<1024x128xbf16, #tpu.memory_space<vmem>>, vector<1024x128xbf16>
    tpu.vector_store %arg5[%c0_6, %c0_7], %8 {strides = array<i32>} : memref<1024x128xbf16, #tpu.memory_space<vmem>>, vector<1024x128xbf16>,
    return
  }
  func.func @transform_0(%arg0: i32, %arg1: i32) -> (i32, i32) {
    %c0_i32 = arith.constant 0 : i32
    %c0_i32_0 = arith.constant 0 : i32
    return %arg0, %c0_i32 : i32, i32
  }
  func.func @transform_1(%arg0: i32, %arg1: i32) -> (i32, i32) {
    %c0_i32 = arith.constant 0 : i32
    %c0_i32_0 = arith.constant 0 : i32
    return %c0_i32, %arg1 : i32, i32
  }
  func.func @transform_2(%arg0: i32, %arg1: i32) -> (i32, i32) {
    %c0_i32 = arith.constant 0 : i32
    %c0_i32_0 = arith.constant 0 : i32
    return %c0_i32, %arg1 : i32, i32
  }
  func.func @transform_3(%arg0: i32, %arg1: i32) -> (i32, i32) {
    %c0_i32 = arith.constant 0 : i32
    return %arg0, %arg1 : i32, i32
  }
}

</mosaic_0001>

<bundles_post_ra>
// kernel: conv2d.1
= control target key start
LH: loop header
LB: loop body
LE: loop exit
PB: predicated region body
PF: predicated region fallthrough
CT: control target
= control target key end

     0   :  { %8 = vsyncpa [#allocation3], 0  ;;  %s4421_s0 = inlined_call_operand.vmem [shape: bf16[2048,160], index: 0, kind: input, shape index: {}]   ;;  %s4422_s1 = inlined_call_operand.vmem [shape: bf16[160,128], index: 1, kind: input, shape index: {}]   ;;  %s4423_s2 = inlined_call_operand.vmem [shape: f32[1,128], index: 2, kind: input, shape index: {}]   ;;  %s4424_s3 = inlined_call_operand.hbm [shape: bf16[2048,128], index: 3, kind: output, shape index: {}]  }
   0x1   :  { %10 = vsyncpa [#allocation3 + $0x1], 0  ;;  %s3875_s12 = smov 0   ;;  %s3877_s13 = smov 0  }
   0x2   :  { %s3879_s14 = smov 0   ;;  %s3881_s15 = smov 0  }
   0x3   :  { %s3883_s16 = smov 0   ;;  %s3885_s17 = smov 0  }
   0x4 LB: > { %s2632_s18 = sadd.s32 4294967295, %s3849_s17   ;;  %s2633_s19 = sadd.s32 4294967294, %s3849_s17   ;;  %s3849_s17 = sphi %s3885_s17, %s16_s17   ;;  %s3845_s16 = sphi %s3883_s16, %s4431_s16   ;;  %s3841_s15 = sphi %s3881_s15, %s4430_s15   ;;  %s3837_s14 = sphi %s3879_s14, %s4429_s14   ;;  %s3833_s13 = sphi %s3877_s13, %s4428_s13   ;;  %s3829_s12 = sphi %s3875_s12, %s4427_s12  }
   0x5   : > { %s28_s20 = sadd.s32 1, %s3845_s16  ;;  %s115_s21 = sadd.s32 1, %s3837_s14 }
   0x6   : > { %p30_p0 = scmp.ge.s32.totalorder %s28_s20, 2  ;;  %p125_p1 = scmp.ne.s32.totalorder %s3837_s14, %s3833_s13 }
   0x7   : > { %p126_p2 = scmp.eq.s32.totalorder %s2632_s18, 1  ;;  %p131_p3 = scmp.ne.s32.totalorder %s3833_s13, %s3829_s12 }
   0x8   : > { %s4433_s20 = smov (%p30_p0, %s28_s20), 0  ;;  %p132_p5 = scmp.eq.s32.totalorder %s2633_s19, 1 }
   0x9   : > { %p3915_p4 = por %p126_p2, %p125_p1  ;;  %s110_s23 = ssub.s32 %s3845_s16, %s4433_s20 }
   0xa   : > { %p2638_p6 = scmp.ge.s32.totalorder %s3849_s17, 1  ;;  %p113_p7 = scmp.eq.s32.totalorder %s110_s23, 0 }
   0xb   : > { %p3922_p8 = por %p132_p5, %p131_p3  ;;  %p173_p9 = scmp.lt.s32.totalorder %s3849_s17, 3 }
   0xc   : > { %s3928_s25 = scalar_select %p113_p7, %s3837_s14, %s115_s21  }
   0xd   : > { %p174_p10 = pnand %p2638_p6, %p173_p9 }
   0xe   : > { %s2640_s28 = sshll.u32 (!%p174_p10), %s3841_s15, 7  ;;  %s202_s10 = sand.u32 (!%p174_p10), 1, %s3833_s13  }
   0xf   : > { %177 = sbr.rel (%p174_p10) target bundleno = 526 (0x20e), region = 32  ;;  %p206_p11 = scmp.lt.s32.totalorder (!%p174_p10), %s2640_s28, 255 }
  0x10   : > { %s2639_s11 = sshll.u32 (!%p174_p10), %s202_s10, 9  ;;  %s3108_s21 = sshll.u32 (!%p174_p10), %s3841_s15, 13 }
  0x11   : > { %s4138_s18 = scalar_lea.vmem (!%p174_p10), [#allocation2], %s2639_s11  ;;  %s4376_s15 = scalar_lea.sflag (!%p174_p10), [#allocation3], %s202_s10 }
  0x12   : > { %s2533_s23 = sshll.u32 (!%p174_p10), %s4138_s18, 4  ;;  %s3852_s30 = smov (!%p174_p10), [#allocation2]   ;;  %s4370_s23 = int_to_ptr.vmem [resolvable:$true] %s2533_s23 }
  0x13   : > { %s3773_s29 = scalar_lea.vmem (!%p174_p10), %s4370_s23, 8192  ;;  %s3777_s4 = sshll.u32 (!%p174_p10), %s3852_s30, 4  ;;  %s3778_s4 = int_to_ptr.vmem [resolvable:$false] %s3777_s4 }
  0x14   : > { %v3570_v0 = vld [vmem:[%s4422_s1 + $0x38] sm:$0xff]   ;;  %v3851_v1 = vmov 0   ;;  %v3571_v2 = vld [vmem:[%s4422_s1 + $0x30] sm:$0xff]   ;;  %s4435_s28 = smov (!%p206_p11, %s2640_s28), 255  ;;  %v3572_v3 = vld [vmem:[%s4422_s1 + $0x28] sm:$0xff]   ;;  %vm1012_vm0 = vcmask 261120   ;;  %p3774_p12 = scmp.ne.s32.totalorder %s4370_s23, %s3773_s29 }
  0x15   : > { %1205 = vmatprep.subr.bf16.mxu0 %v3851_v1  ;;  %3492 = vmatprep.subr.bf16.mxu1 %v3851_v1  ;;  %s2979_s6 = sshll.u32 %s4435_s28, 3  ;;  %v3573_v4 = vld [vmem:[%s4422_s1 + $0x20] sm:$0xff]   ;;  %v3574_v7 = vld [vmem:[%s4422_s1 + $0x18] sm:$0xff]   ;;  %v3575_v8 = vld [vmem:[%s4422_s1 + $0x10] sm:$0xff]   ;;  %s4368_s28 = scalar_lea.hbm %s4424_s3, %s3108_s21 }
  0x16   : > { %1206 = vmatpush1.bf16.msra.mxu0 %v3570_v0  ;;  %3502 = vmatpush1.bf16.msra.mxu1 %v3570_v0  ;;  %s3943_s9 = scalar_lea.vmem %s4421_s0, %s2979_s6  ;;  %v3576_v9 = vld [vmem:[%s4422_s1 + $0x8] sm:$0xff]   ;;  %v3577_v10 = vld [vmem:[%s4422_s1] sm:$0xff]   ;;  %p3775_p13 = pnand %p3774_p12, %p3915_p4 }
  0x17   : > { %1207 = vmatprep.subr.bf16.mxu0 %v3851_v1  ;;  %3493 = vmatprep.subr.bf16.mxu1 %v3851_v1  ;;  %v3582_v5 = vld [vmem:[%s3943_s9 + $0x4] ss:$8 sps:$4 sm:$0xff]   ;;  %v3580_v13 = vld [vmem:[%s3943_s9] ss:$8 sps:$4 sm:$0xff]   ;;  %v3586_v15 = vld [vmem:[%s3943_s9 + $0x14] ss:$8 sps:$4 sm:$0xff]   ;;  %p3780_p1 = scmp.lt.s32.totalorder %s4370_s23, %s3778_s4 }
  0x18   : > { %v3585_v6 = vld [vmem:[%s3943_s9 + $0x204] ss:$8 sps:$4 sm:$0xff]   ;;  %2782 = vmatprep.mubr.msk.bf16.mxu0 %vm1012_vm0, %v3582_v5  ;;  %v3583_v14 = vld [vmem:[%s3943_s9 + $0x200] ss:$8 sps:$4 sm:$0xff]   ;;  %v3588_v16 = vld [vmem:[%s3943_s9 + $0x214] ss:$8 sps:$4 sm:$0xff]   ;;  %p3776_p0 = pneg %p3775_p13 }
  0x19   : > { %2814 = vmatprep.mubr.msk.bf16.mxu1 %vm1012_vm0, %v3585_v6  ;;  %v3578_v11 = vld [vmem:[%s4422_s1 + $0x48] sm:$0xff]   ;;  %v3579_v12 = vld [vmem:[%s4422_s1 + $0x40] sm:$0xff]   ;;  %v3590_v17 = vld [vmem:[%s3943_s9 + $0x10] ss:$8 sps:$4 sm:$0xff]   ;;  %s3779_s5 = scalar_lea.vmem %s3778_s4, 16384 }
  0x1a   : > { %1208 = vmatpush1.bf16.msra.mxu0 %v3571_v2  ;;  %3503 = vmatpush1.bf16.msra.mxu1 %v3571_v2  ;;  %v3591_v18 = vld [vmem:[%s3943_s9 + $0x210] ss:$8 sps:$4 sm:$0xff]   ;;  %v3592_v19 = vld [vmem:[%s3943_s9 + $0x24] ss:$8 sps:$4 sm:$0xff]   ;;  %v3596_v21 = vld [vmem:[%s3943_s9 + $0x20] ss:$8 sps:$4 sm:$0xff]   ;;  %p3781_p2 = scmp.lt.s32.totalorder %s3779_s5, %s3773_s29 }
  0x1b   : > { %1209 = vmatprep.subr.bf16.mxu0 %v3851_v1  ;;  %3494 = vmatprep.subr.bf16.mxu1 %v3851_v1  ;;  %v3594_v20 = vld [vmem:[%s3943_s9 + $0x224] ss:$8 sps:$4 sm:$0xff]   ;;  %v3597_v22 = vld [vmem:[%s3943_s9 + $0x220] ss:$8 sps:$4 sm:$0xff]   ;;  %v3598_v23 = vld [vmem:[%s3943_s9 + $0x34] ss:$8 sps:$4 sm:$0xff]  }
  0x1c   : > { %v3600_v24 = vld [vmem:[%s3943_s9 + $0x234] ss:$8 sps:$4 sm:$0xff]   ;;  %v3602_v25 = vld [vmem:[%s3943_s9 + $0x30] ss:$8 sps:$4 sm:$0xff]   ;;  %v3604_v27 = vld [vmem:[%s3943_s9 + $0x44] ss:$8 sps:$4 sm:$0xff]   ;;  %p3782_p3 = por %p3781_p2, %p3780_p1 }
  0x1d   : > { %v3603_v26 = vld [vmem:[%s3943_s9 + $0x230] ss:$8 sps:$4 sm:$0xff]   ;;  %v3606_v28 = vld [vmem:[%s3943_s9 + $0x244] ss:$8 sps:$4 sm:$0xff]   ;;  %v3608_v29 = vld [vmem:[%s3943_s9 + $0x40] ss:$8 sps:$4 sm:$0xff]  }
  0x1e   : > { %1210 = vmatpush1.bf16.msra.mxu0 %v3572_v3  ;;  %3504 = vmatpush1.bf16.msra.mxu1 %v3572_v3  ;;  %v3609_v30 = vld [vmem:[%s3943_s9 + $0x240] ss:$8 sps:$4 sm:$0xff]   ;;  %v3610_v31 = vld [vmem:[%s3943_s9 + $0x54] ss:$8 sps:$4 sm:$0xff]   ;;  %v3614_v33 = vld [vmem:[%s3943_s9 + $0x50] ss:$8 sps:$4 sm:$0xff]   ;;  %p3783_p5 = pnand %p3782_p3, %p3776_p0 }
  0x1f   : > { %1211 = vmatprep.subr.bf16.mxu0 %v3851_v1  ;;  %3495 = vmatprep.subr.bf16.mxu1 %v3851_v1  ;;  %v3612_v32 = vld [vmem:[%s3943_s9 + $0x254] ss:$8 sps:$4 sm:$0xff]   ;;  %v3615_v34 = vld [vmem:[%s3943_s9 + $0x250] ss:$8 sps:$4 sm:$0xff]   ;;  %v3616_v35 = vld [vmem:[%s3943_s9 + $0x64] ss:$8 sps:$4 sm:$0xff]  }
  0x20   : > { %v3618_v36 = vld [vmem:[%s3943_s9 + $0x264] ss:$8 sps:$4 sm:$0xff]   ;;  %v3620_v37 = vld [vmem:[%s3943_s9 + $0x60] ss:$8 sps:$4 sm:$0xff]   ;;  %v3622_v39 = vld [vmem:[%s3943_s9 + $0x74] ss:$8 sps:$4 sm:$0xff]  }
  0x21   : > { %v3621_v38 = vld [vmem:[%s3943_s9 + $0x260] ss:$8 sps:$4 sm:$0xff]   ;;  %v3624_v40 = vld [vmem:[%s3943_s9 + $0x274] ss:$8 sps:$4 sm:$0xff]   ;;  %v3626_v41 = vld [vmem:[%s3943_s9 + $0x70] ss:$8 sps:$4 sm:$0xff]  }
  0x22   : > { %1212 = vmatpush1.bf16.msra.mxu0 %v3573_v4  ;;  %3505 = vmatpush1.bf16.msra.mxu1 %v3573_v4  ;;  %v3627_v42 = vld [vmem:[%s3943_s9 + $0x270] ss:$8 sps:$4 sm:$0xff]   ;;  %v3628_v43 = vld [vmem:[%s3943_s9 + $0x84] ss:$8 sps:$4 sm:$0xff]   ;;  %v3632_v45 = vld [vmem:[%s3943_s9 + $0x80] ss:$8 sps:$4 sm:$0xff]  }
  0x23   : > { %1213 = vmatprep.subr.bf16.mxu0 %v3851_v1  ;;  %3496 = vmatprep.subr.bf16.mxu1 %v3851_v1  ;;  %v3630_v44 = vld [vmem:[%s3943_s9 + $0x284] ss:$8 sps:$4 sm:$0xff]   ;;  %v3633_v46 = vld [vmem:[%s3943_s9 + $0x280] ss:$8 sps:$4 sm:$0xff]   ;;  %v3634_v47 = vld [vmem:[%s3943_s9 + $0x94] ss:$8 sps:$4 sm:$0xff]  }
  0x24   : > { %v3636_v48 = vld [vmem:[%s3943_s9 + $0x294] ss:$8 sps:$4 sm:$0xff]   ;;  %v3638_v49 = vld [vmem:[%s3943_s9 + $0x90] ss:$8 sps:$4 sm:$0xff]   ;;  %v3640_v51 = vld [vmem:[%s3943_s9 + $0xa4] ss:$8 sps:$4 sm:$0xff]  }
  0x25   : > { %v3639_v50 = vld [vmem:[%s3943_s9 + $0x290] ss:$8 sps:$4 sm:$0xff]   ;;  %v3642_v52 = vld [vmem:[%s3943_s9 + $0x2a4] ss:$8 sps:$4 sm:$0xff]   ;;  %v3644_v53 = vld [vmem:[%s3943_s9 + $0xa0] ss:$8 sps:$4 sm:$0xff]  }
  0x26   : > { %1214 = vmatpush1.bf16.msra.mxu0 %v3574_v7  ;;  %3506 = vmatpush1.bf16.msra.mxu1 %v3574_v7  ;;  %v3645_v54 = vld [vmem:[%s3943_s9 + $0x2a0] ss:$8 sps:$4 sm:$0xff]   ;;  %v3646_v55 = vld [vmem:[%s3943_s9 + $0xb4] ss:$8 sps:$4 sm:$0xff]   ;;  %v3650_v57 = vld [vmem:[%s3943_s9 + $0xb0] ss:$8 sps:$4 sm:$0xff]  }
  0x27   : > { %1215 = vmatprep.subr.bf16.mxu0 %v3851_v1  ;;  %3497 = vmatprep.subr.bf16.mxu1 %v3851_v1  ;;  %v3648_v56 = vld [vmem:[%s3943_s9 + $0x2b4] ss:$8 sps:$4 sm:$0xff]   ;;  %v3651_v58 = vld [vmem:[%s3943_s9 + $0x2b0] ss:$8 sps:$4 sm:$0xff]   ;;  %v3652_v59 = vld [vmem:[%s3943_s9 + $0xc4] ss:$8 sps:$4 sm:$0xff]  }
  0x28   : > { %v3654_v60 = vld [vmem:[%s3943_s9 + $0x2c4] ss:$8 sps:$4 sm:$0xff]   ;;  %v3656_v61 = vld [vmem:[%s3943_s9 + $0xc0] ss:$8 sps:$4 sm:$0xff]   ;;  %v3658_v63 = vld [vmem:[%s3943_s9 + $0xd4] ss:$8 sps:$4 sm:$0xff]  }
  0x29   : > { %v3657_v62 = vld [vmem:[%s3943_s9 + $0x2c0] ss:$8 sps:$4 sm:$0xff]   ;;  %v3660_v0 = vld [vmem:[%s3943_s9 + $0x2d4] ss:$8 sps:$4 sm:$0xff]   ;;  %v3663_v2 = vld [vmem:[%s3943_s9 + $0x2d0] ss:$8 sps:$4 sm:$0xff]  }
  0x2a   : > { %1216 = vmatpush1.bf16.msra.mxu0 %v3575_v8  ;;  %3507 = vmatpush1.bf16.msra.mxu1 %v3575_v8  ;;  %v3664_v3 = vld [vmem:[%s3943_s9 + $0xe4] ss:$8 sps:$4 sm:$0xff]   ;;  %v3668_v5 = vld [vmem:[%s3943_s9 + $0xe0] ss:$8 sps:$4 sm:$0xff]   ;;  %v3670_v7 = vld [vmem:[%s3943_s9 + $0xf4] ss:$8 sps:$4 sm:$0xff]  }
  0x2b   : > { %1217 = vmatprep.subr.bf16.mxu0 %v3851_v1  ;;  %3498 = vmatprep.subr.bf16.mxu1 %v3851_v1  ;;  %v3666_v4 = vld [vmem:[%s3943_s9 + $0x2e4] ss:$8 sps:$4 sm:$0xff]   ;;  %v3669_v6 = vld [vmem:[%s3943_s9 + $0x2e0] ss:$8 sps:$4 sm:$0xff]   ;;  %v3672_v8 = vld [vmem:[%s3943_s9 + $0x2f4] ss:$8 sps:$4 sm:$0xff]  }
  0x2e   : > { %1218 = vmatpush1.bf16.msra.mxu0 %v3576_v9  ;;  %3508 = vmatpush1.bf16.msra.mxu1 %v3576_v9  ;;  %v3674_v9 = vld [vmem:[%s3943_s9 + $0xf0] ss:$8 sps:$4 sm:$0xff]  }
  0x2f   : > { %1219 = vmatprep.subr.bf16.mxu0 %v3851_v1  ;;  %3499 = vmatprep.subr.bf16.mxu1 %v3851_v1 }
  0x32   : > { %1220 = vmatpush1.bf16.msra.mxu0 %v3577_v10  ;;  %3509 = vmatpush1.bf16.msra.mxu1 %v3577_v10  ;;  %v3675_v10 = vld [vmem:[%s3943_s9 + $0x2f0] ss:$8 sps:$4 sm:$0xff]  }
  0x33   : > { %1233 = vmatprep.subr.bf16.mxu0 %v3851_v1  ;;  %3500 = vmatprep.subr.bf16.mxu1 %v3851_v1 }
  0x36   : > { %1234 = vmatpush2.bf16.msra.mxu0 %v3578_v11  ;;  %3510 = vmatpush2.bf16.msra.mxu1 %v3578_v11  ;;  %v3676_v11 = vld [vmem:[%s3943_s9 + $0x104] ss:$8 sps:$4 sm:$0xff]  }
  0x37   : > { %1235 = vmatprep.subr.bf16.mxu0 %v3851_v1  ;;  %3501 = vmatprep.subr.bf16.mxu1 %v3851_v1  ;;  %v3662_v1 = vld [vmem:[%s3943_s9 + $0xd0] ss:$8 sps:$4 sm:$0xff]  }
  0x3a   : > { %1236 = vmatpush2.bf16.msra.mxu0 %v3579_v12  ;;  %3511 = vmatpush2.bf16.msra.mxu1 %v3579_v12  ;;  %v3678_v12 = vld [vmem:[%s3943_s9 + $0x304] ss:$8 sps:$4 sm:$0xff]  }
  0x3d   : > { %1238 = vmatmul.mubr.bf16.vlgmr.msra.gmra.mxu0 %v3580_v13  ;;  %1494 = vmatmul.mubr.bf16.vlgmr.msra.gmra.mxu1 %v3583_v14  ;;  %v3680_v13 = vld [vmem:[%s3943_s9 + $0x100] ss:$8 sps:$4 sm:$0xff]  }
  0x3e   : > { %2783 = vmatprep.mubr.msk.bf16.mxu0 %vm1012_vm0, %v3586_v15  ;;  %2815 = vmatprep.mubr.msk.bf16.mxu1 %vm1012_vm0, %v3588_v16  ;;  %v3681_v14 = vld [vmem:[%s3943_s9 + $0x300] ss:$8 sps:$4 sm:$0xff]   ;;  %v3682_v15 = vld [vmem:[%s3943_s9 + $0x114] ss:$8 sps:$4 sm:$0xff]  }
  0x3f   : > { %v3684_v16 = vld [vmem:[%s3943_s9 + $0x314] ss:$8 sps:$4 sm:$0xff]  }
  0x45   : > { %1246 = vmatmul.mubr.bf16.gmra.mxu0 %v3590_v17  ;;  %1502 = vmatmul.mubr.bf16.gmra.mxu1 %v3591_v18  ;;  %v3686_v17 = vld [vmem:[%s3943_s9 + $0x110] ss:$8 sps:$4 sm:$0xff]  }
  0x46   : > { %2784 = vmatprep.mubr.msk.bf16.mxu0 %vm1012_vm0, %v3592_v19  ;;  %2816 = vmatprep.mubr.msk.bf16.mxu1 %vm1012_vm0, %v3594_v20  ;;  %v3687_v18 = vld [vmem:[%s3943_s9 + $0x310] ss:$8 sps:$4 sm:$0xff]   ;;  %v3688_v19 = vld [vmem:[%s3943_s9 + $0x124] ss:$8 sps:$4 sm:$0xff]  }
  0x47   : > { %v3690_v20 = vld [vmem:[%s3943_s9 + $0x324] ss:$8 sps:$4 sm:$0xff]  }
  0x4d   : > { %1254 = vmatmul.mubr.bf16.gmra.mxu0 %v3596_v21  ;;  %1510 = vmatmul.mubr.bf16.gmra.mxu1 %v3597_v22  ;;  %v3692_v21 = vld [vmem:[%s3943_s9 + $0x120] ss:$8 sps:$4 sm:$0xff]  }
  0x4e   : > { %2785 = vmatprep.mubr.msk.bf16.mxu0 %vm1012_vm0, %v3598_v23  ;;  %2817 = vmatprep.mubr.msk.bf16.mxu1 %vm1012_vm0, %v3600_v24  ;;  %v3693_v22 = vld [vmem:[%s3943_s9 + $0x320] ss:$8 sps:$4 sm:$0xff]   ;;  %v3694_v23 = vld [vmem:[%s3943_s9 + $0x134] ss:$8 sps:$4 sm:$0xff]  }
  0x4f   : > { %v3696_v24 = vld [vmem:[%s3943_s9 + $0x334] ss:$8 sps:$4 sm:$0xff]  }
  0x55   : > { %1262 = vmatmul.mubr.bf16.gmra.mxu0 %v3602_v25  ;;  %1518 = vmatmul.mubr.bf16.gmra.mxu1 %v3603_v26  ;;  %v3698_v25 = vld [vmem:[%s3943_s9 + $0x130] ss:$8 sps:$4 sm:$0xff]  }
  0x56   : > { %2786 = vmatprep.mubr.msk.bf16.mxu0 %vm1012_vm0, %v3604_v27  ;;  %2818 = vmatprep.mubr.msk.bf16.mxu1 %vm1012_vm0, %v3606_v28  ;;  %v3699_v26 = vld [vmem:[%s3943_s9 + $0x330] ss:$8 sps:$4 sm:$0xff]   ;;  %v3700_v27 = vld [vmem:[%s3943_s9 + $0x144] ss:$8 sps:$4 sm:$0xff]  }
  0x57   : > { %v3702_v28 = vld [vmem:[%s3943_s9 + $0x344] ss:$8 sps:$4 sm:$0xff]  }
  0x5d   : > { %1270 = vmatmul.mubr.bf16.gmra.mxu0 %v3608_v29  ;;  %1526 = vmatmul.mubr.bf16.gmra.mxu1 %v3609_v30  ;;  %v3704_v29 = vld [vmem:[%s3943_s9 + $0x140] ss:$8 sps:$4 sm:$0xff]  }
  0x5e   : > { %2787 = vmatprep.mubr.msk.bf16.mxu0 %vm1012_vm0, %v3610_v31  ;;  %2819 = vmatprep.mubr.msk.bf16.mxu1 %vm1012_vm0, %v3612_v32  ;;  %v3705_v30 = vld [vmem:[%s3943_s9 + $0x340] ss:$8 sps:$4 sm:$0xff]   ;;  %v3706_v31 = vld [vmem:[%s3943_s9 + $0x154] ss:$8 sps:$4 sm:$0xff]  }
  0x5f   : > { %v3708_v32 = vld [vmem:[%s3943_s9 + $0x354] ss:$8 sps:$4 sm:$0xff]  }
  0x65   : > { %1278 = vmatmul.mubr.bf16.gmra.mxu0 %v3614_v33  ;;  %1534 = vmatmul.mubr.bf16.gmra.mxu1 %v3615_v34  ;;  %v3710_v33 = vld [vmem:[%s3943_s9 + $0x150] ss:$8 sps:$4 sm:$0xff]  }
  0x66   : > { %2788 = vmatprep.mubr.msk.bf16.mxu0 %vm1012_vm0, %v3616_v35  ;;  %2820 = vmatprep.mubr.msk.bf16.mxu1 %vm1012_vm0, %v3618_v36  ;;  %v3711_v34 = vld [vmem:[%s3943_s9 + $0x350] ss:$8 sps:$4 sm:$0xff]   ;;  %v3712_v35 = vld [vmem:[%s3943_s9 + $0x164] ss:$8 sps:$4 sm:$0xff]  }
  0x67   : > { %v3714_v36 = vld [vmem:[%s3943_s9 + $0x364] ss:$8 sps:$4 sm:$0xff]  }
  0x6d   : > { %1286 = vmatmul.mubr.bf16.gmra.mxu0 %v3620_v37  ;;  %1542 = vmatmul.mubr.bf16.gmra.mxu1 %v3621_v38  ;;  %v3716_v37 = vld [vmem:[%s3943_s9 + $0x160] ss:$8 sps:$4 sm:$0xff]  }
  0x6e   : > { %2789 = vmatprep.mubr.msk.bf16.mxu0 %vm1012_vm0, %v3622_v39  ;;  %2821 = vmatprep.mubr.msk.bf16.mxu1 %vm1012_vm0, %v3624_v40  ;;  %v3717_v38 = vld [vmem:[%s3943_s9 + $0x360] ss:$8 sps:$4 sm:$0xff]   ;;  %v3718_v39 = vld [vmem:[%s3943_s9 + $0x174] ss:$8 sps:$4 sm:$0xff]  }
  0x6f   : > { %v3720_v40 = vld [vmem:[%s3943_s9 + $0x374] ss:$8 sps:$4 sm:$0xff]  }
  0x75   : > { %1294 = vmatmul.mubr.bf16.gmra.mxu0 %v3626_v41  ;;  %1550 = vmatmul.mubr.bf16.gmra.mxu1 %v3627_v42  ;;  %v3722_v41 = vld [vmem:[%s3943_s9 + $0x170] ss:$8 sps:$4 sm:$0xff]  }
  0x76   : > { %2790 = vmatprep.mubr.msk.bf16.mxu0 %vm1012_vm0, %v3628_v43  ;;  %2822 = vmatprep.mubr.msk.bf16.mxu1 %vm1012_vm0, %v3630_v44  ;;  %v3723_v42 = vld [vmem:[%s3943_s9 + $0x370] ss:$8 sps:$4 sm:$0xff]   ;;  %v3724_v43 = vld [vmem:[%s3943_s9 + $0x184] ss:$8 sps:$4 sm:$0xff]  }
  0x77   : > { %v3726_v44 = vld [vmem:[%s3943_s9 + $0x384] ss:$8 sps:$4 sm:$0xff]  }
  0x7d   : > { %1302 = vmatmul.mubr.bf16.gmra.mxu0 %v3632_v45  ;;  %1558 = vmatmul.mubr.bf16.gmra.mxu1 %v3633_v46  ;;  %v3728_v45 = vld [vmem:[%s3943_s9 + $0x180] ss:$8 sps:$4 sm:$0xff]  }
  0x7e   : > { %2791 = vmatprep.mubr.msk.bf16.mxu0 %vm1012_vm0, %v3634_v47  ;;  %2823 = vmatprep.mubr.msk.bf16.mxu1 %vm1012_vm0, %v3636_v48  ;;  %v3729_v46 = vld [vmem:[%s3943_s9 + $0x380] ss:$8 sps:$4 sm:$0xff]   ;;  %v3730_v47 = vld [vmem:[%s3943_s9 + $0x194] ss:$8 sps:$4 sm:$0xff]  }
  0x7f   : > { %v3732_v48 = vld [vmem:[%s3943_s9 + $0x394] ss:$8 sps:$4 sm:$0xff]  }
  0x85   : > { %1310 = vmatmul.mubr.bf16.gmra.mxu0 %v3638_v49  ;;  %1566 = vmatmul.mubr.bf16.gmra.mxu1 %v3639_v50  ;;  %v4121_v49 = vld [vmem:[%s4423_s2] ss:$0 sm:$0xff] }
  0x86   : > { %2792 = vmatprep.mubr.msk.bf16.mxu0 %vm1012_vm0, %v3640_v51  ;;  %2824 = vmatprep.mubr.msk.bf16.mxu1 %vm1012_vm0, %v3642_v52 }
  0x8d   : > { %1318 = vmatmul.mubr.bf16.gmra.mxu0 %v3644_v53  ;;  %1574 = vmatmul.mubr.bf16.gmra.mxu1 %v3645_v54 }
  0x8e   : > { %2793 = vmatprep.mubr.msk.bf16.mxu0 %vm1012_vm0, %v3646_v55  ;;  %2825 = vmatprep.mubr.msk.bf16.mxu1 %vm1012_vm0, %v3648_v56 }
  0x95   : > { %1326 = vmatmul.mubr.bf16.gmra.mxu0 %v3650_v57  ;;  %1582 = vmatmul.mubr.bf16.gmra.mxu1 %v3651_v58  ;;  %v3734_v58 = vld [vmem:[%s3943_s9 + $0x190] ss:$8 sps:$4 sm:$0xff]  }
  0x96   : > { %2794 = vmatprep.mubr.msk.bf16.mxu0 %vm1012_vm0, %v3652_v59  ;;  %2826 = vmatprep.mubr.msk.bf16.mxu1 %vm1012_vm0, %v3654_v60  ;;  %v3735_v59 = vld [vmem:[%s3943_s9 + $0x390] ss:$8 sps:$4 sm:$0xff]  }
  0x9d   : > { %1334 = vmatmul.mubr.bf16.gmra.mxu0 %v3656_v61  ;;  %1590 = vmatmul.mubr.bf16.gmra.mxu1 %v3657_v62  ;;  %v3736_v62 = vld [vmem:[%s3943_s9 + $0x1a4] ss:$8 sps:$4 sm:$0xff]  }
  0x9e   : > { %2795 = vmatprep.mubr.msk.bf16.mxu0 %vm1012_vm0, %v3658_v63  ;;  %2827 = vmatprep.mubr.msk.bf16.mxu1 %vm1012_vm0, %v3660_v0 }
  0xa5   : > { %1342 = vmatmul.mubr.bf16.gmra.mxu0 %v3662_v1  ;;  %1598 = vmatmul.mubr.bf16.gmra.mxu1 %v3663_v2  ;;  %v3738_v1 = vld [vmem:[%s3943_s9 + $0x3a4] ss:$8 sps:$4 sm:$0xff]  }
  0xa6   : > { %2796 = vmatprep.mubr.msk.bf16.mxu0 %vm1012_vm0, %v3664_v3  ;;  %2828 = vmatprep.mubr.msk.bf16.mxu1 %vm1012_vm0, %v3666_v4 }
  0xad   : > { %1350 = vmatmul.mubr.bf16.gmra.mxu0 %v3668_v5  ;;  %1606 = vmatmul.mubr.bf16.gmra.mxu1 %v3669_v6 }
  0xae   : > { %2797 = vmatprep.mubr.msk.bf16.mxu0 %vm1012_vm0, %v3670_v7  ;;  %2829 = vmatprep.mubr.msk.bf16.mxu1 %vm1012_vm0, %v3672_v8 }
  0xb5   : > { %1358 = vmatmul.mubr.bf16.gmra.mxu0 %v3674_v9  ;;  %1614 = vmatmul.mubr.bf16.gmra.mxu1 %v3675_v10 }
  0xb6   : > { %2798 = vmatprep.mubr.msk.bf16.mxu0 %vm1012_vm0, %v3676_v11  ;;  %2830 = vmatprep.mubr.msk.bf16.mxu1 %vm1012_vm0, %v3678_v12 }
  0xbd   : > { %1366 = vmatmul.mubr.bf16.gmra.mxu0 %v3680_v13  ;;  %1622 = vmatmul.mubr.bf16.gmra.mxu1 %v3681_v14 }
  0xbe   : > { %2799 = vmatprep.mubr.msk.bf16.mxu0 %vm1012_vm0, %v3682_v15  ;;  %2831 = vmatprep.mubr.msk.bf16.mxu1 %vm1012_vm0, %v3684_v16  ;;  %v3740_v16 = vld [vmem:[%s3943_s9 + $0x1a0] ss:$8 sps:$4 sm:$0xff]  }
  0xc5   : > { %1374 = vmatmul.mubr.bf16.gmra.mxu0 %v3686_v17  ;;  %1630 = vmatmul.mubr.bf16.gmra.mxu1 %v3687_v18  ;;  %v3741_v17 = vld [vmem:[%s3943_s9 + $0x3a0] ss:$8 sps:$4 sm:$0xff]  }
  0xc6   : > { %2800 = vmatprep.mubr.msk.bf16.mxu0 %vm1012_vm0, %v3688_v19  ;;  %2832 = vmatprep.mubr.msk.bf16.mxu1 %vm1012_vm0, %v3690_v20  ;;  %v3742_v20 = vld [vmem:[%s3943_s9 + $0x1b4] ss:$8 sps:$4 sm:$0xff]  }
  0xcd   : > { %1382 = vmatmul.mubr.bf16.gmra.mxu0 %v3692_v21  ;;  %1638 = vmatmul.mubr.bf16.gmra.mxu1 %v3693_v22 }
  0xce   : > { %2801 = vmatprep.mubr.msk.bf16.mxu0 %vm1012_vm0, %v3694_v23  ;;  %2833 = vmatprep.mubr.msk.bf16.mxu1 %vm1012_vm0, %v3696_v24  ;;  %v3744_v23 = vld [vmem:[%s3943_s9 + $0x3b4] ss:$8 sps:$4 sm:$0xff]  }
  0xd5   : > { %1390 = vmatmul.mubr.bf16.gmra.mxu0 %v3698_v25  ;;  %1646 = vmatmul.mubr.bf16.gmra.mxu1 %v3699_v26 }
  0xd6   : > { %2802 = vmatprep.mubr.msk.bf16.mxu0 %vm1012_vm0, %v3700_v27  ;;  %2834 = vmatprep.mubr.msk.bf16.mxu1 %vm1012_vm0, %v3702_v28 }
  0xdd   : > { %1398 = vmatmul.mubr.bf16.gmra.mxu0 %v3704_v29  ;;  %1654 = vmatmul.mubr.bf16.gmra.mxu1 %v3705_v30 }
  0xde   : > { %2803 = vmatprep.mubr.msk.bf16.mxu0 %vm1012_vm0, %v3706_v31  ;;  %2835 = vmatprep.mubr.msk.bf16.mxu1 %vm1012_vm0, %v3708_v32 }
  0xe5   : > { %1406 = vmatmul.mubr.bf16.gmra.mxu0 %v3710_v33  ;;  %1662 = vmatmul.mubr.bf16.gmra.mxu1 %v3711_v34 }
  0xe6   : > { %2804 = vmatprep.mubr.msk.bf16.mxu0 %vm1012_vm0, %v3712_v35  ;;  %2836 = vmatprep.mubr.msk.bf16.mxu1 %vm1012_vm0, %v3714_v36 }
  0xed   : > { %1414 = vmatmul.mubr.bf16.gmra.mxu0 %v3716_v37  ;;  %1670 = vmatmul.mubr.bf16.gmra.mxu1 %v3717_v38  ;;  %v3746_v38 = vld [vmem:[%s3943_s9 + $0x1b0] ss:$8 sps:$4 sm:$0xff]  }
  0xee   : > { %2805 = vmatprep.mubr.msk.bf16.mxu0 %vm1012_vm0, %v3718_v39  ;;  %2837 = vmatprep.mubr.msk.bf16.mxu1 %vm1012_vm0, %v3720_v40  ;;  %v3747_v39 = vld [vmem:[%s3943_s9 + $0x3b0] ss:$8 sps:$4 sm:$0xff]  }
  0xf5   : > { %1422 = vmatmul.mubr.bf16.gmra.mxu0 %v3722_v41  ;;  %1678 = vmatmul.mubr.bf16.gmra.mxu1 %v3723_v42  ;;  %v3748_v42 = vld [vmem:[%s3943_s9 + $0x1c4] ss:$8 sps:$4 sm:$0xff]  }
  0xf6   : > { %2806 = vmatprep.mubr.msk.bf16.mxu0 %vm1012_vm0, %v3724_v43  ;;  %2838 = vmatprep.mubr.msk.bf16.mxu1 %vm1012_vm0, %v3726_v44 }
  0xfd   : > { %v1239_v50 = vpop.f32.mrf.mxu0  ;;  %1430 = vmatmul.mubr.bf16.gmra.mxu0 %v3728_v45  ;;  %v1495_v51 = vpop.f32.mrf.mxu1  ;;  %1686 = vmatmul.mubr.bf16.gmra.mxu1 %v3729_v46  ;;  %v3750_v45 = vld [vmem:[%s3943_s9 + $0x3c4] ss:$8 sps:$4 sm:$0xff]  }
  0xfe   : > { %2807 = vmatprep.mubr.msk.bf16.mxu0 %vm1012_vm0, %v3730_v47  ;;  %2839 = vmatprep.mubr.msk.bf16.mxu1 %vm1012_vm0, %v3732_v48  ;;  %v1240_v54 = vadd.f32 %v4121_v49, %v1239_v50  ;;  %v1496_v55 = vadd.f32 %v4121_v49, %v1495_v51 }
  0xff   : > { %v1241_v52 = vpop.f32.mrf.mxu0  ;;  %v1497_v53 = vpop.f32.mrf.mxu1 }
 0x100   : > { %v1750_v2 = vmax.f32 %v1240_v54, 0.0  ;;  %v1814_v3 = vmax.f32 %v1496_v55, 0.0 }
 0x101   : > { %v1242_v56 = vpop.f32.mrf.mxu0  ;;  %v1498_v57 = vpop.f32.mrf.mxu1 }
 0x102   : > { %v1243_v60 = vadd.f32 %v4121_v49, %v1242_v56  ;;  %v1499_v61 = vadd.f32 %v4121_v49, %v1498_v57 }
 0x103   : > { %v1244_v63 = vpop.f32.mrf.mxu0  ;;  %v1500_v0 = vpop.f32.mrf.mxu1 }
 0x104   : > { %v1751_v4 = vmax.f32 %v1243_v60, 0.0  ;;  %v1815_v5 = vmax.f32 %v1499_v61, 0.0  ;;  %v3752_v61 = vld [vmem:[%s3943_s9 + $0x1c0] ss:$8 sps:$4 sm:$0xff]  }
 0x105   : > { %v1247_v6 = vpop.f32.mrf.mxu0  ;;  %1438 = vmatmul.mubr.bf16.gmra.mxu0 %v3734_v58  ;;  %v1503_v7 = vpop.f32.mrf.mxu1  ;;  %1694 = vmatmul.mubr.bf16.gmra.mxu1 %v3735_v59 }
 0x106   : > { %v3112_v8 = vpack.c.bf16 %v1751_v4, %v1750_v2  ;;  %v3272_v9 = vpack.c.bf16 %v1815_v5, %v1814_v3  ;;  %2808 = vmatprep.mubr.msk.bf16.mxu0 %vm1012_vm0, %v3736_v62  ;;  %2840 = vmatprep.mubr.msk.bf16.mxu1 %vm1012_vm0, %v3738_v1  ;;  %v1248_v12 = vadd.f32 %v4121_v49, %v1247_v6  ;;  %v3753_v62 = vld [vmem:[%s3943_s9 + $0x3c0] ss:$8 sps:$4 sm:$0xff]   ;;  %v3754_v1 = vld [vmem:[%s3943_s9 + $0x1d4] ss:$8 sps:$4 sm:$0xff]  }
 0x107   : > { %v1249_v10 = vpop.f32.mrf.mxu0  ;;  %v1505_v11 = vpop.f32.mrf.mxu1  ;;  %v1504_v13 = vadd.f32 %v4121_v49, %v1503_v7  ;;  %v3756_v4 = vld [vmem:[%s3943_s9 + $0x3d4] ss:$8 sps:$4 sm:$0xff]  }
 0x108   : > { %3113 = vst [vmem:[%s4138_s18] sm:$0xff] %v3112_v8   ;;  %3460 = vst [vmem:[%s4138_s18 + $0x100] sm:$0xff] %v3272_v9   ;;  %v1752_v24 = vmax.f32 %v1248_v12, 0.0 }
 0x109   : > { %v1250_v14 = vpop.f32.mrf.mxu0  ;;  %v1506_v15 = vpop.f32.mrf.mxu1  ;;  %v1816_v25 = vmax.f32 %v1504_v13, 0.0 }
 0x10a   : > { %v1251_v18 = vadd.f32 %v4121_v49, %v1250_v14  ;;  %v1507_v19 = vadd.f32 %v4121_v49, %v1506_v15 }
 0x10b   : > { %v1252_v21 = vpop.f32.mrf.mxu0  ;;  %v1508_v22 = vpop.f32.mrf.mxu1 }
 0x10c   : > { %v1753_v26 = vmax.f32 %v1251_v18, 0.0  ;;  %v1817_v27 = vmax.f32 %v1507_v19, 0.0  ;;  %v3758_v19 = vld [vmem:[%s3943_s9 + $0x1d0] ss:$8 sps:$4 sm:$0xff]  }
 0x10d   : > { %v1255_v28 = vpop.f32.mrf.mxu0  ;;  %1446 = vmatmul.mubr.bf16.gmra.mxu0 %v3740_v16  ;;  %v1511_v29 = vpop.f32.mrf.mxu1  ;;  %1702 = vmatmul.mubr.bf16.gmra.mxu1 %v3741_v17 }
 0x10e   : > { %v3117_v30 = vpack.c.bf16 %v1753_v26, %v1752_v24  ;;  %v3277_v31 = vpack.c.bf16 %v1817_v27, %v1816_v25  ;;  %2809 = vmatprep.mubr.msk.bf16.mxu0 %vm1012_vm0, %v3742_v20  ;;  %2841 = vmatprep.mubr.msk.bf16.mxu1 %vm1012_vm0, %v3744_v23  ;;  %v1256_v34 = vadd.f32 %v4121_v49, %v1255_v28  ;;  %v3759_v20 = vld [vmem:[%s3943_s9 + $0x3d0] ss:$8 sps:$4 sm:$0xff]   ;;  %v3760_v23 = vld [vmem:[%s3943_s9 + $0x1e4] ss:$8 sps:$4 sm:$0xff]  }
 0x10f   : > { %v1257_v32 = vpop.f32.mrf.mxu0  ;;  %v1513_v33 = vpop.f32.mrf.mxu1  ;;  %v1512_v35 = vadd.f32 %v4121_v49, %v1511_v29  ;;  %v3762_v26 = vld [vmem:[%s3943_s9 + $0x3e4] ss:$8 sps:$4 sm:$0xff]  }
 0x110   : > { %3429 = vst [vmem:[%s4138_s18 + $0x8] sm:$0xff] %v3117_v30   ;;  %3461 = vst [vmem:[%s4138_s18 + $0x108] sm:$0xff] %v3277_v31   ;;  %v1754_v46 = vmax.f32 %v1256_v34, 0.0 }
 0x111   : > { %v1258_v36 = vpop.f32.mrf.mxu0  ;;  %v1514_v37 = vpop.f32.mrf.mxu1  ;;  %v1818_v47 = vmax.f32 %v1512_v35, 0.0 }
 0x112   : > { %v1259_v40 = vadd.f32 %v4121_v49, %v1258_v36  ;;  %v1515_v41 = vadd.f32 %v4121_v49, %v1514_v37 }
 0x113   : > { %v1260_v43 = vpop.f32.mrf.mxu0  ;;  %v1516_v44 = vpop.f32.mrf.mxu1 }
 0x114   : > { %v1755_v48 = vmax.f32 %v1259_v40, 0.0  ;;  %v1819_v50 = vmax.f32 %v1515_v41, 0.0  ;;  %v3764_v41 = vld [vmem:[%s3943_s9 + $0x1e0] ss:$8 sps:$4 sm:$0xff]  }
 0x115   : > { %v1263_v51 = vpop.f32.mrf.mxu0  ;;  %1454 = vmatmul.mubr.bf16.gmra.mxu0 %v3746_v38  ;;  %v1519_v52 = vpop.f32.mrf.mxu1  ;;  %1710 = vmatmul.mubr.bf16.gmra.mxu1 %v3747_v39 }
 0x116   : > { %v3122_v53 = vpack.c.bf16 %v1755_v48, %v1754_v46  ;;  %v3282_v54 = vpack.c.bf16 %v1819_v50, %v1818_v47  ;;  %2810 = vmatprep.mubr.msk.bf16.mxu0 %vm1012_vm0, %v3748_v42  ;;  %2842 = vmatprep.mubr.msk.bf16.mxu1 %vm1012_vm0, %v3750_v45  ;;  %v1264_v57 = vadd.f32 %v4121_v49, %v1263_v51  ;;  %v3765_v42 = vld [vmem:[%s3943_s9 + $0x3e0] ss:$8 sps:$4 sm:$0xff]   ;;  %v3766_v45 = vld [vmem:[%s3943_s9 + $0x1f4] ss:$8 sps:$4 sm:$0xff]  }
 0x117   : > { %v1265_v55 = vpop.f32.mrf.mxu0  ;;  %v1521_v56 = vpop.f32.mrf.mxu1  ;;  %v1520_v58 = vadd.f32 %v4121_v49, %v1519_v52  ;;  %v3768_v48 = vld [vmem:[%s3943_s9 + $0x3f4] ss:$8 sps:$4 sm:$0xff]  }
 0x118   : > { %3430 = vst [vmem:[%s4138_s18 + $0x10] sm:$0xff] %v3122_v53   ;;  %3462 = vst [vmem:[%s4138_s18 + $0x110] sm:$0xff] %v3282_v54   ;;  %v1756_v5 = vmax.f32 %v1264_v57, 0.0 }
 0x119   : > { %v1266_v59 = vpop.f32.mrf.mxu0  ;;  %v1522_v60 = vpop.f32.mrf.mxu1  ;;  %v1820_v6 = vmax.f32 %v1520_v58, 0.0 }
 0x11a   : > { %v1267_v63 = vadd.f32 %v4121_v49, %v1266_v59  ;;  %v1523_v0 = vadd.f32 %v4121_v49, %v1522_v60 }
 0x11b   : > { %v1268_v2 = vpop.f32.mrf.mxu0  ;;  %v1524_v3 = vpop.f32.mrf.mxu1 }
 0x11c   : > { %v1757_v7 = vmax.f32 %v1267_v63, 0.0  ;;  %v1821_v8 = vmax.f32 %v1523_v0, 0.0  ;;  %v3770_v0 = vld [vmem:[%s3943_s9 + $0x1f0] ss:$8 sps:$4 sm:$0xff]  }
 0x11d   : > { %v1271_v9 = vpop.f32.mrf.mxu0  ;;  %1462 = vmatmul.mubr.bf16.gmra.mxu0 %v3752_v61  ;;  %v1527_v10 = vpop.f32.mrf.mxu1  ;;  %1718 = vmatmul.mubr.bf16.gmra.mxu1 %v3753_v62 }
 0x11e   : > { %v3127_v11 = vpack.c.bf16 %v1757_v7, %v1756_v5  ;;  %v3287_v12 = vpack.c.bf16 %v1821_v8, %v1820_v6  ;;  %2811 = vmatprep.mubr.msk.bf16.mxu0 %vm1012_vm0, %v3754_v1  ;;  %2843 = vmatprep.mubr.msk.bf16.mxu1 %vm1012_vm0, %v3756_v4  ;;  %v1272_v15 = vadd.f32 %v4121_v49, %v1271_v9  ;;  %v3771_v1 = vld [vmem:[%s3943_s9 + $0x3f0] ss:$8 sps:$4 sm:$0xff]  }
 0x11f   : > { %v1273_v13 = vpop.f32.mrf.mxu0  ;;  %v1529_v14 = vpop.f32.mrf.mxu1  ;;  %v1528_v16 = vadd.f32 %v4121_v49, %v1527_v10 }
 0x120   : > { %3431 = vst [vmem:[%s4138_s18 + $0x18] sm:$0xff] %v3127_v11   ;;  %3463 = vst [vmem:[%s4138_s18 + $0x118] sm:$0xff] %v3287_v12   ;;  %v1758_v27 = vmax.f32 %v1272_v15, 0.0 }
 0x121   : > { %v1274_v17 = vpop.f32.mrf.mxu0  ;;  %v1530_v18 = vpop.f32.mrf.mxu1  ;;  %v1822_v28 = vmax.f32 %v1528_v16, 0.0 }
 0x122   : > { %v1275_v21 = vadd.f32 %v4121_v49, %v1274_v17  ;;  %v1531_v22 = vadd.f32 %v4121_v49, %v1530_v18 }
 0x123   : > { %v1276_v24 = vpop.f32.mrf.mxu0  ;;  %v1532_v25 = vpop.f32.mrf.mxu1 }
 0x124   : > { %v1759_v29 = vmax.f32 %v1275_v21, 0.0  ;;  %v1823_v30 = vmax.f32 %v1531_v22, 0.0 }
 0x125   : > { %v1279_v31 = vpop.f32.mrf.mxu0  ;;  %1470 = vmatmul.mubr.bf16.gmra.mxu0 %v3758_v19  ;;  %v1535_v32 = vpop.f32.mrf.mxu1  ;;  %1726 = vmatmul.mubr.bf16.gmra.mxu1 %v3759_v20 }
 0x126   : > { %v3132_v33 = vpack.c.bf16 %v1759_v29, %v1758_v27  ;;  %v3292_v34 = vpack.c.bf16 %v1823_v30, %v1822_v28  ;;  %2812 = vmatprep.mubr.msk.bf16.mxu0 %vm1012_vm0, %v3760_v23  ;;  %2844 = vmatprep.mubr.msk.bf16.mxu1 %vm1012_vm0, %v3762_v26  ;;  %v1280_v37 = vadd.f32 %v4121_v49, %v1279_v31 }
 0x127   : > { %v1281_v35 = vpop.f32.mrf.mxu0  ;;  %v1537_v36 = vpop.f32.mrf.mxu1  ;;  %v1536_v38 = vadd.f32 %v4121_v49, %v1535_v32 }
 0x128   : > { %3432 = vst [vmem:[%s4138_s18 + $0x20] sm:$0xff] %v3132_v33   ;;  %3464 = vst [vmem:[%s4138_s18 + $0x120] sm:$0xff] %v3292_v34   ;;  %v1760_v50 = vmax.f32 %v1280_v37, 0.0 }
 0x129   : > { %v1282_v39 = vpop.f32.mrf.mxu0  ;;  %v1538_v40 = vpop.f32.mrf.mxu1  ;;  %v1824_v51 = vmax.f32 %v1536_v38, 0.0 }
 0x12a   : > { %v1283_v43 = vadd.f32 %v4121_v49, %v1282_v39  ;;  %v1539_v44 = vadd.f32 %v4121_v49, %v1538_v40 }
 0x12b   : > { %v1284_v46 = vpop.f32.mrf.mxu0  ;;  %v1540_v47 = vpop.f32.mrf.mxu1 }
 0x12c   : > { %v1761_v52 = vmax.f32 %v1283_v43, 0.0  ;;  %v1825_v53 = vmax.f32 %v1539_v44, 0.0 }
 0x12d   : > { %v1287_v54 = vpop.f32.mrf.mxu0  ;;  %1478 = vmatmul.mubr.bf16.gmra.mxu0 %v3764_v41  ;;  %v1543_v55 = vpop.f32.mrf.mxu1  ;;  %1734 = vmatmul.mubr.bf16.gmra.mxu1 %v3765_v42 }
 0x12e   : > { %v3137_v56 = vpack.c.bf16 %v1761_v52, %v1760_v50  ;;  %v3297_v57 = vpack.c.bf16 %v1825_v53, %v1824_v51  ;;  %2813 = vmatprep.mubr.msk.bf16.mxu0 %vm1012_vm0, %v3766_v45  ;;  %2845 = vmatprep.mubr.msk.bf16.mxu1 %vm1012_vm0, %v3768_v48  ;;  %v1288_v60 = vadd.f32 %v4121_v49, %v1287_v54 }
 0x12f   : > { %v1289_v58 = vpop.f32.mrf.mxu0  ;;  %v1545_v59 = vpop.f32.mrf.mxu1  ;;  %v1544_v61 = vadd.f32 %v4121_v49, %v1543_v55 }
 0x130   : > { %3433 = vst [vmem:[%s4138_s18 + $0x28] sm:$0xff] %v3137_v56   ;;  %3465 = vst [vmem:[%s4138_s18 + $0x128] sm:$0xff] %v3297_v57   ;;  %v1762_v6 = vmax.f32 %v1288_v60, 0.0 }
 0x131   : > { %v1290_v62 = vpop.f32.mrf.mxu0  ;;  %v1546_v63 = vpop.f32.mrf.mxu1  ;;  %v1826_v7 = vmax.f32 %v1544_v61, 0.0 }
 0x132   : > { %v1291_v2 = vadd.f32 %v4121_v49, %v1290_v62  ;;  %v1547_v3 = vadd.f32 %v4121_v49, %v1546_v63 }
 0x133   : > { %v1292_v4 = vpop.f32.mrf.mxu0  ;;  %v1548_v5 = vpop.f32.mrf.mxu1 }
 0x134   : > { %v1763_v8 = vmax.f32 %v1291_v2, 0.0  ;;  %v1827_v9 = vmax.f32 %v1547_v3, 0.0 }
 0x135   : > { %v1295_v10 = vpop.f32.mrf.mxu0  ;;  %1486 = vmatmul.mubr.bf16.gmra.mxu0 %v3770_v0  ;;  %v1551_v11 = vpop.f32.mrf.mxu1  ;;  %1742 = vmatmul.mubr.bf16.gmra.mxu1 %v3771_v1 }
 0x136   : > { %v3142_v12 = vpack.c.bf16 %v1763_v8, %v1762_v6  ;;  %v3302_v13 = vpack.c.bf16 %v1827_v9, %v1826_v7  ;;  %v1296_v16 = vadd.f32 %v4121_v49, %v1295_v10  ;;  %v1552_v17 = vadd.f32 %v4121_v49, %v1551_v11 }
 0x137   : > { %v1297_v14 = vpop.f32.mrf.mxu0  ;;  %v1553_v15 = vpop.f32.mrf.mxu1 }
 0x138   : > { %3434 = vst [vmem:[%s4138_s18 + $0x30] sm:$0xff] %v3142_v12   ;;  %3466 = vst [vmem:[%s4138_s18 + $0x130] sm:$0xff] %v3302_v13   ;;  %v1764_v24 = vmax.f32 %v1296_v16, 0.0  ;;  %v1828_v25 = vmax.f32 %v1552_v17, 0.0 }
 0x139   : > { %v1298_v18 = vpop.f32.mrf.mxu0  ;;  %v1554_v19 = vpop.f32.mrf.mxu1 }
 0x13a   : > { %v1299_v20 = vadd.f32 %v4121_v49, %v1298_v18  ;;  %v1555_v21 = vadd.f32 %v4121_v49, %v1554_v19 }
 0x13b   : > { %v1300_v22 = vpop.f32.mrf.mxu0  ;;  %v1556_v23 = vpop.f32.mrf.mxu1 }
 0x13c   : > { %v1765_v26 = vmax.f32 %v1299_v20, 0.0  ;;  %v1829_v27 = vmax.f32 %v1555_v21, 0.0 }
 0x13d   : > { %v1303_v28 = vpop.f32.mrf.mxu0  ;;  %v1559_v29 = vpop.f32.mrf.mxu1 }
 0x13e   : > { %v3147_v30 = vpack.c.bf16 %v1765_v26, %v1764_v24  ;;  %v3307_v31 = vpack.c.bf16 %v1829_v27, %v1828_v25  ;;  %v1304_v34 = vadd.f32 %v4121_v49, %v1303_v28  ;;  %v1560_v35 = vadd.f32 %v4121_v49, %v1559_v29 }
 0x13f   : > { %v1305_v32 = vpop.f32.mrf.mxu0  ;;  %v1561_v33 = vpop.f32.mrf.mxu1 }
 0x140   : > { %3435 = vst [vmem:[%s4138_s18 + $0x38] sm:$0xff] %v3147_v30   ;;  %3467 = vst [vmem:[%s4138_s18 + $0x138] sm:$0xff] %v3307_v31   ;;  %v1766_v42 = vmax.f32 %v1304_v34, 0.0  ;;  %v1830_v43 = vmax.f32 %v1560_v35, 0.0 }
 0x141   : > { %v1306_v36 = vpop.f32.mrf.mxu0  ;;  %v1562_v37 = vpop.f32.mrf.mxu1 }
 0x142   : > { %v1307_v38 = vadd.f32 %v4121_v49, %v1306_v36  ;;  %v1563_v39 = vadd.f32 %v4121_v49, %v1562_v37 }
 0x143   : > { %v1308_v40 = vpop.f32.mrf.mxu0  ;;  %v1564_v41 = vpop.f32.mrf.mxu1 }
 0x144   : > { %v1767_v44 = vmax.f32 %v1307_v38, 0.0  ;;  %v1831_v45 = vmax.f32 %v1563_v39, 0.0 }
 0x145   : > { %v1311_v46 = vpop.f32.mrf.mxu0  ;;  %v1567_v47 = vpop.f32.mrf.mxu1 }
 0x146   : > { %v3152_v48 = vpack.c.bf16 %v1767_v44, %v1766_v42  ;;  %v3312_v50 = vpack.c.bf16 %v1831_v45, %v1830_v43  ;;  %v1312_v53 = vadd.f32 %v4121_v49, %v1311_v46  ;;  %v1568_v54 = vadd.f32 %v4121_v49, %v1567_v47 }
 0x147   : > { %v1313_v51 = vpop.f32.mrf.mxu0  ;;  %v1569_v52 = vpop.f32.mrf.mxu1 }
 0x148   : > { %3436 = vst [vmem:[%s4138_s18 + $0x40] sm:$0xff] %v3152_v48   ;;  %3468 = vst [vmem:[%s4138_s18 + $0x140] sm:$0xff] %v3312_v50   ;;  %v1768_v61 = vmax.f32 %v1312_v53, 0.0  ;;  %v1832_v62 = vmax.f32 %v1568_v54, 0.0 }
 0x149   : > { %v1314_v55 = vpop.f32.mrf.mxu0  ;;  %v1570_v56 = vpop.f32.mrf.mxu1 }
 0x14a   : > { %v1315_v57 = vadd.f32 %v4121_v49, %v1314_v55  ;;  %v1571_v58 = vadd.f32 %v4121_v49, %v1570_v56 }
 0x14b   : > { %v1316_v59 = vpop.f32.mrf.mxu0  ;;  %v1572_v60 = vpop.f32.mrf.mxu1 }
 0x14c   : > { %v1769_v63 = vmax.f32 %v1315_v57, 0.0  ;;  %v1833_v0 = vmax.f32 %v1571_v58, 0.0 }
 0x14d   : > { %v1319_v1 = vpop.f32.mrf.mxu0  ;;  %v1575_v2 = vpop.f32.mrf.mxu1 }
 0x14e   : > { %v3157_v3 = vpack.c.bf16 %v1769_v63, %v1768_v61  ;;  %v3317_v4 = vpack.c.bf16 %v1833_v0, %v1832_v62  ;;  %v1320_v7 = vadd.f32 %v4121_v49, %v1319_v1  ;;  %v1576_v8 = vadd.f32 %v4121_v49, %v1575_v2 }
 0x14f   : > { %v1321_v5 = vpop.f32.mrf.mxu0  ;;  %v1577_v6 = vpop.f32.mrf.mxu1 }
 0x150   : > { %3437 = vst [vmem:[%s4138_s18 + $0x48] sm:$0xff] %v3157_v3   ;;  %3469 = vst [vmem:[%s4138_s18 + $0x148] sm:$0xff] %v3317_v4   ;;  %v1770_v15 = vmax.f32 %v1320_v7, 0.0  ;;  %v1834_v16 = vmax.f32 %v1576_v8, 0.0 }
 0x151   : > { %v1322_v9 = vpop.f32.mrf.mxu0  ;;  %v1578_v10 = vpop.f32.mrf.mxu1 }
 0x152   : > { %v1323_v11 = vadd.f32 %v4121_v49, %v1322_v9  ;;  %v1579_v12 = vadd.f32 %v4121_v49, %v1578_v10 }
 0x153   : > { %v1324_v13 = vpop.f32.mrf.mxu0  ;;  %v1580_v14 = vpop.f32.mrf.mxu1 }
 0x154   : > { %v1771_v17 = vmax.f32 %v1323_v11, 0.0  ;;  %v1835_v18 = vmax.f32 %v1579_v12, 0.0 }
 0x155   : > { %v1327_v19 = vpop.f32.mrf.mxu0  ;;  %v1583_v20 = vpop.f32.mrf.mxu1 }
 0x156   : > { %v3162_v21 = vpack.c.bf16 %v1771_v17, %v1770_v15  ;;  %v3322_v22 = vpack.c.bf16 %v1835_v18, %v1834_v16  ;;  %v1328_v25 = vadd.f32 %v4121_v49, %v1327_v19  ;;  %v1584_v26 = vadd.f32 %v4121_v49, %v1583_v20 }
 0x157   : > { %v1329_v23 = vpop.f32.mrf.mxu0  ;;  %v1585_v24 = vpop.f32.mrf.mxu1 }
 0x158   : > { %3438 = vst [vmem:[%s4138_s18 + $0x50] sm:$0xff] %v3162_v21   ;;  %3470 = vst [vmem:[%s4138_s18 + $0x150] sm:$0xff] %v3322_v22   ;;  %v1772_v33 = vmax.f32 %v1328_v25, 0.0  ;;  %v1836_v34 = vmax.f32 %v1584_v26, 0.0 }
 0x159   : > { %v1330_v27 = vpop.f32.mrf.mxu0  ;;  %v1586_v28 = vpop.f32.mrf.mxu1 }
 0x15a   : > { %v1331_v29 = vadd.f32 %v4121_v49, %v1330_v27  ;;  %v1587_v30 = vadd.f32 %v4121_v49, %v1586_v28 }
 0x15b   : > { %v1332_v31 = vpop.f32.mrf.mxu0  ;;  %v1588_v32 = vpop.f32.mrf.mxu1 }
 0x15c   : > { %v1773_v35 = vmax.f32 %v1331_v29, 0.0  ;;  %v1837_v36 = vmax.f32 %v1587_v30, 0.0 }
 0x15d   : > { %v1335_v37 = vpop.f32.mrf.mxu0  ;;  %v1591_v38 = vpop.f32.mrf.mxu1 }
 0x15e   : > { %v3167_v39 = vpack.c.bf16 %v1773_v35, %v1772_v33  ;;  %v3327_v40 = vpack.c.bf16 %v1837_v36, %v1836_v34  ;;  %v1336_v43 = vadd.f32 %v4121_v49, %v1335_v37  ;;  %v1592_v44 = vadd.f32 %v4121_v49, %v1591_v38 }
 0x15f   : > { %v1337_v41 = vpop.f32.mrf.mxu0  ;;  %v1593_v42 = vpop.f32.mrf.mxu1 }
 0x160   : > { %3439 = vst [vmem:[%s4138_s18 + $0x58] sm:$0xff] %v3167_v39   ;;  %3471 = vst [vmem:[%s4138_s18 + $0x158] sm:$0xff] %v3327_v40   ;;  %v1774_v52 = vmax.f32 %v1336_v43, 0.0  ;;  %v1838_v53 = vmax.f32 %v1592_v44, 0.0 }
 0x161   : > { %v1338_v45 = vpop.f32.mrf.mxu0  ;;  %v1594_v46 = vpop.f32.mrf.mxu1 }
 0x162   : > { %v1339_v47 = vadd.f32 %v4121_v49, %v1338_v45  ;;  %v1595_v48 = vadd.f32 %v4121_v49, %v1594_v46 }
 0x163   : > { %v1340_v50 = vpop.f32.mrf.mxu0  ;;  %v1596_v51 = vpop.f32.mrf.mxu1 }
 0x164   : > { %v1775_v54 = vmax.f32 %v1339_v47, 0.0  ;;  %v1839_v55 = vmax.f32 %v1595_v48, 0.0 }
 0x165   : > { %v1343_v56 = vpop.f32.mrf.mxu0  ;;  %v1599_v57 = vpop.f32.mrf.mxu1 }
 0x166   : > { %v3172_v58 = vpack.c.bf16 %v1775_v54, %v1774_v52  ;;  %v3332_v59 = vpack.c.bf16 %v1839_v55, %v1838_v53  ;;  %v1344_v62 = vadd.f32 %v4121_v49, %v1343_v56  ;;  %v1600_v63 = vadd.f32 %v4121_v49, %v1599_v57 }
 0x167   : > { %v1345_v60 = vpop.f32.mrf.mxu0  ;;  %v1601_v61 = vpop.f32.mrf.mxu1 }
 0x168   : > { %3440 = vst [vmem:[%s4138_s18 + $0x60] sm:$0xff] %v3172_v58   ;;  %3472 = vst [vmem:[%s4138_s18 + $0x160] sm:$0xff] %v3332_v59   ;;  %v1776_v6 = vmax.f32 %v1344_v62, 0.0  ;;  %v1840_v7 = vmax.f32 %v1600_v63, 0.0 }
 0x169   : > { %v1346_v0 = vpop.f32.mrf.mxu0  ;;  %v1602_v1 = vpop.f32.mrf.mxu1 }
 0x16a   : > { %v1347_v2 = vadd.f32 %v4121_v49, %v1346_v0  ;;  %v1603_v3 = vadd.f32 %v4121_v49, %v1602_v1 }
 0x16b   : > { %v1348_v4 = vpop.f32.mrf.mxu0  ;;  %v1604_v5 = vpop.f32.mrf.mxu1 }
 0x16c   : > { %v1777_v8 = vmax.f32 %v1347_v2, 0.0  ;;  %v1841_v9 = vmax.f32 %v1603_v3, 0.0 }
 0x16d   : > { %v1351_v10 = vpop.f32.mrf.mxu0  ;;  %v1607_v11 = vpop.f32.mrf.mxu1 }
 0x16e   : > { %v3177_v12 = vpack.c.bf16 %v1777_v8, %v1776_v6  ;;  %v3337_v13 = vpack.c.bf16 %v1841_v9, %v1840_v7  ;;  %v1352_v16 = vadd.f32 %v4121_v49, %v1351_v10  ;;  %v1608_v17 = vadd.f32 %v4121_v49, %v1607_v11 }
 0x16f   : > { %v1353_v14 = vpop.f32.mrf.mxu0  ;;  %v1609_v15 = vpop.f32.mrf.mxu1 }
 0x170   : > { %3441 = vst [vmem:[%s4138_s18 + $0x68] sm:$0xff] %v3177_v12   ;;  %3473 = vst [vmem:[%s4138_s18 + $0x168] sm:$0xff] %v3337_v13   ;;  %v1778_v24 = vmax.f32 %v1352_v16, 0.0  ;;  %v1842_v25 = vmax.f32 %v1608_v17, 0.0 }
 0x171   : > { %v1354_v18 = vpop.f32.mrf.mxu0  ;;  %v1610_v19 = vpop.f32.mrf.mxu1 }
 0x172   : > { %v1355_v20 = vadd.f32 %v4121_v49, %v1354_v18  ;;  %v1611_v21 = vadd.f32 %v4121_v49, %v1610_v19 }
 0x173   : > { %v1356_v22 = vpop.f32.mrf.mxu0  ;;  %v1612_v23 = vpop.f32.mrf.mxu1 }
 0x174   : > { %v1779_v26 = vmax.f32 %v1355_v20, 0.0  ;;  %v1843_v27 = vmax.f32 %v1611_v21, 0.0 }
 0x175   : > { %v1359_v28 = vpop.f32.mrf.mxu0  ;;  %v1615_v29 = vpop.f32.mrf.mxu1 }
 0x176   : > { %v3182_v30 = vpack.c.bf16 %v1779_v26, %v1778_v24  ;;  %v3342_v31 = vpack.c.bf16 %v1843_v27, %v1842_v25  ;;  %v1360_v34 = vadd.f32 %v4121_v49, %v1359_v28  ;;  %v1616_v35 = vadd.f32 %v4121_v49, %v1615_v29 }
 0x177   : > { %v1361_v32 = vpop.f32.mrf.mxu0  ;;  %v1617_v33 = vpop.f32.mrf.mxu1 }
 0x178   : > { %3442 = vst [vmem:[%s4138_s18 + $0x70] sm:$0xff] %v3182_v30   ;;  %3474 = vst [vmem:[%s4138_s18 + $0x170] sm:$0xff] %v3342_v31   ;;  %v1780_v42 = vmax.f32 %v1360_v34, 0.0  ;;  %v1844_v43 = vmax.f32 %v1616_v35, 0.0 }
 0x179   : > { %v1362_v36 = vpop.f32.mrf.mxu0  ;;  %v1618_v37 = vpop.f32.mrf.mxu1 }
 0x17a   : > { %v1363_v38 = vadd.f32 %v4121_v49, %v1362_v36  ;;  %v1619_v39 = vadd.f32 %v4121_v49, %v1618_v37 }
 0x17b   : > { %v1364_v40 = vpop.f32.mrf.mxu0  ;;  %v1620_v41 = vpop.f32.mrf.mxu1 }
 0x17c   : > { %v1781_v44 = vmax.f32 %v1363_v38, 0.0  ;;  %v1845_v45 = vmax.f32 %v1619_v39, 0.0 }
 0x17d   : > { %v1367_v46 = vpop.f32.mrf.mxu0  ;;  %v1623_v47 = vpop.f32.mrf.mxu1 }
 0x17e   : > { %v3187_v48 = vpack.c.bf16 %v1781_v44, %v1780_v42  ;;  %v3347_v50 = vpack.c.bf16 %v1845_v45, %v1844_v43  ;;  %v1368_v53 = vadd.f32 %v4121_v49, %v1367_v46  ;;  %v1624_v54 = vadd.f32 %v4121_v49, %v1623_v47 }
 0x17f   : > { %v1369_v51 = vpop.f32.mrf.mxu0  ;;  %v1625_v52 = vpop.f32.mrf.mxu1 }
 0x180   : > { %3443 = vst [vmem:[%s4138_s18 + $0x78] sm:$0xff] %v3187_v48   ;;  %3475 = vst [vmem:[%s4138_s18 + $0x178] sm:$0xff] %v3347_v50   ;;  %v1782_v61 = vmax.f32 %v1368_v53, 0.0  ;;  %v1846_v62 = vmax.f32 %v1624_v54, 0.0 }
 0x181   : > { %v1370_v55 = vpop.f32.mrf.mxu0  ;;  %v1626_v56 = vpop.f32.mrf.mxu1 }
 0x182   : > { %v1371_v57 = vadd.f32 %v4121_v49, %v1370_v55  ;;  %v1627_v58 = vadd.f32 %v4121_v49, %v1626_v56 }
 0x183   : > { %v1372_v59 = vpop.f32.mrf.mxu0  ;;  %v1628_v60 = vpop.f32.mrf.mxu1 }
 0x184   : > { %v1783_v63 = vmax.f32 %v1371_v57, 0.0  ;;  %v1847_v0 = vmax.f32 %v1627_v58, 0.0 }
 0x185   : > { %v1375_v1 = vpop.f32.mrf.mxu0  ;;  %v1631_v2 = vpop.f32.mrf.mxu1 }
 0x186   : > { %v3192_v3 = vpack.c.bf16 %v1783_v63, %v1782_v61  ;;  %v3352_v4 = vpack.c.bf16 %v1847_v0, %v1846_v62  ;;  %v1376_v7 = vadd.f32 %v4121_v49, %v1375_v1  ;;  %v1632_v8 = vadd.f32 %v4121_v49, %v1631_v2 }
 0x187   : > { %v1377_v5 = vpop.f32.mrf.mxu0  ;;  %v1633_v6 = vpop.f32.mrf.mxu1 }
 0x188   : > { %3444 = vst [vmem:[%s4138_s18 + $0x80] sm:$0xff] %v3192_v3   ;;  %3476 = vst [vmem:[%s4138_s18 + $0x180] sm:$0xff] %v3352_v4   ;;  %v1784_v15 = vmax.f32 %v1376_v7, 0.0  ;;  %v1848_v16 = vmax.f32 %v1632_v8, 0.0 }
 0x189   : > { %v1378_v9 = vpop.f32.mrf.mxu0  ;;  %v1634_v10 = vpop.f32.mrf.mxu1 }
 0x18a   : > { %v1379_v11 = vadd.f32 %v4121_v49, %v1378_v9  ;;  %v1635_v12 = vadd.f32 %v4121_v49, %v1634_v10 }
 0x18b   : > { %v1380_v13 = vpop.f32.mrf.mxu0  ;;  %v1636_v14 = vpop.f32.mrf.mxu1 }
 0x18c   : > { %v1785_v17 = vmax.f32 %v1379_v11, 0.0  ;;  %v1849_v18 = vmax.f32 %v1635_v12, 0.0 }
 0x18d   : > { %v1383_v19 = vpop.f32.mrf.mxu0  ;;  %v1639_v20 = vpop.f32.mrf.mxu1 }
 0x18e   : > { %v3197_v21 = vpack.c.bf16 %v1785_v17, %v1784_v15  ;;  %v3357_v22 = vpack.c.bf16 %v1849_v18, %v1848_v16  ;;  %v1384_v25 = vadd.f32 %v4121_v49, %v1383_v19  ;;  %v1640_v26 = vadd.f32 %v4121_v49, %v1639_v20 }
 0x18f   : > { %v1385_v23 = vpop.f32.mrf.mxu0  ;;  %v1641_v24 = vpop.f32.mrf.mxu1 }
 0x190   : > { %3445 = vst [vmem:[%s4138_s18 + $0x88] sm:$0xff] %v3197_v21   ;;  %3477 = vst [vmem:[%s4138_s18 + $0x188] sm:$0xff] %v3357_v22   ;;  %v1786_v33 = vmax.f32 %v1384_v25, 0.0  ;;  %v1850_v34 = vmax.f32 %v1640_v26, 0.0 }
 0x191   : > { %v1386_v27 = vpop.f32.mrf.mxu0  ;;  %v1642_v28 = vpop.f32.mrf.mxu1 }
 0x192   : > { %v1387_v29 = vadd.f32 %v4121_v49, %v1386_v27  ;;  %v1643_v30 = vadd.f32 %v4121_v49, %v1642_v28 }
 0x193   : > { %v1388_v31 = vpop.f32.mrf.mxu0  ;;  %v1644_v32 = vpop.f32.mrf.mxu1 }
 0x194   : > { %v1787_v35 = vmax.f32 %v1387_v29, 0.0  ;;  %v1851_v36 = vmax.f32 %v1643_v30, 0.0 }
 0x195   : > { %v1391_v37 = vpop.f32.mrf.mxu0  ;;  %v1647_v38 = vpop.f32.mrf.mxu1 }
 0x196   : > { %v3202_v39 = vpack.c.bf16 %v1787_v35, %v1786_v33  ;;  %v3362_v40 = vpack.c.bf16 %v1851_v36, %v1850_v34  ;;  %v1392_v43 = vadd.f32 %v4121_v49, %v1391_v37  ;;  %v1648_v44 = vadd.f32 %v4121_v49, %v1647_v38 }
 0x197   : > { %v1393_v41 = vpop.f32.mrf.mxu0  ;;  %v1649_v42 = vpop.f32.mrf.mxu1 }
 0x198   : > { %3446 = vst [vmem:[%s4138_s18 + $0x90] sm:$0xff] %v3202_v39   ;;  %3478 = vst [vmem:[%s4138_s18 + $0x190] sm:$0xff] %v3362_v40   ;;  %v1788_v52 = vmax.f32 %v1392_v43, 0.0  ;;  %v1852_v53 = vmax.f32 %v1648_v44, 0.0 }
 0x199   : > { %v1394_v45 = vpop.f32.mrf.mxu0  ;;  %v1650_v46 = vpop.f32.mrf.mxu1 }
 0x19a   : > { %v1395_v47 = vadd.f32 %v4121_v49, %v1394_v45  ;;  %v1651_v48 = vadd.f32 %v4121_v49, %v1650_v46 }
 0x19b   : > { %v1396_v50 = vpop.f32.mrf.mxu0  ;;  %v1652_v51 = vpop.f32.mrf.mxu1 }
 0x19c   : > { %v1789_v54 = vmax.f32 %v1395_v47, 0.0  ;;  %v1853_v55 = vmax.f32 %v1651_v48, 0.0 }
 0x19d   : > { %v1399_v56 = vpop.f32.mrf.mxu0  ;;  %v1655_v57 = vpop.f32.mrf.mxu1 }
 0x19e   : > { %v3207_v58 = vpack.c.bf16 %v1789_v54, %v1788_v52  ;;  %v3367_v59 = vpack.c.bf16 %v1853_v55, %v1852_v53  ;;  %v1400_v62 = vadd.f32 %v4121_v49, %v1399_v56  ;;  %v1656_v63 = vadd.f32 %v4121_v49, %v1655_v57  ;;  %v4309_v53 = vld [vmem:[%s4423_s2] ss:$0 sm:$0xff] }
 0x19f   : > { %v1401_v60 = vpop.f32.mrf.mxu0  ;;  %v1657_v61 = vpop.f32.mrf.mxu1 }
 0x1a0   : > { %3447 = vst [vmem:[%s4138_s18 + $0x98] sm:$0xff] %v3207_v58   ;;  %3479 = vst [vmem:[%s4138_s18 + $0x198] sm:$0xff] %v3367_v59   ;;  %v1790_v6 = vmax.f32 %v1400_v62, 0.0  ;;  %v1854_v7 = vmax.f32 %v1656_v63, 0.0 }
 0x1a1   : > { %v1402_v0 = vpop.f32.mrf.mxu0  ;;  %v1658_v1 = vpop.f32.mrf.mxu1 }
 0x1a2   : > { %v1403_v2 = vadd.f32 %v4121_v49, %v1402_v0  ;;  %v1659_v3 = vadd.f32 %v4121_v49, %v1658_v1 }
 0x1a3   : > { %v1404_v4 = vpop.f32.mrf.mxu0  ;;  %v1660_v5 = vpop.f32.mrf.mxu1 }
 0x1a4   : > { %v1791_v8 = vmax.f32 %v1403_v2, 0.0  ;;  %v1855_v9 = vmax.f32 %v1659_v3, 0.0 }
 0x1a5   : > { %v1407_v10 = vpop.f32.mrf.mxu0  ;;  %v1663_v11 = vpop.f32.mrf.mxu1 }
 0x1a6   : > { %v3212_v12 = vpack.c.bf16 %v1791_v8, %v1790_v6  ;;  %v3372_v13 = vpack.c.bf16 %v1855_v9, %v1854_v7  ;;  %v1408_v16 = vadd.f32 %v4121_v49, %v1407_v10  ;;  %v1664_v17 = vadd.f32 %v4121_v49, %v1663_v11 }
 0x1a7   : > { %v1409_v14 = vpop.f32.mrf.mxu0  ;;  %v1665_v15 = vpop.f32.mrf.mxu1 }
 0x1a8   : > { %3448 = vst [vmem:[%s4138_s18 + $0xa0] sm:$0xff] %v3212_v12   ;;  %3480 = vst [vmem:[%s4138_s18 + $0x1a0] sm:$0xff] %v3372_v13   ;;  %v1792_v24 = vmax.f32 %v1408_v16, 0.0  ;;  %v1856_v25 = vmax.f32 %v1664_v17, 0.0 }
 0x1a9   : > { %v1410_v18 = vpop.f32.mrf.mxu0  ;;  %v1666_v19 = vpop.f32.mrf.mxu1 }
 0x1aa   : > { %v1411_v20 = vadd.f32 %v4121_v49, %v1410_v18  ;;  %v1667_v21 = vadd.f32 %v4121_v49, %v1666_v19 }
 0x1ab   : > { %v1412_v22 = vpop.f32.mrf.mxu0  ;;  %v1668_v23 = vpop.f32.mrf.mxu1 }
 0x1ac   : > { %v1793_v26 = vmax.f32 %v1411_v20, 0.0  ;;  %v1857_v27 = vmax.f32 %v1667_v21, 0.0 }
 0x1ad   : > { %v1415_v28 = vpop.f32.mrf.mxu0  ;;  %v1671_v29 = vpop.f32.mrf.mxu1 }
 0x1ae   : > { %v3217_v30 = vpack.c.bf16 %v1793_v26, %v1792_v24  ;;  %v3377_v31 = vpack.c.bf16 %v1857_v27, %v1856_v25  ;;  %v1416_v34 = vadd.f32 %v4121_v49, %v1415_v28  ;;  %v1672_v35 = vadd.f32 %v4121_v49, %v1671_v29 }
 0x1af   : > { %v1417_v32 = vpop.f32.mrf.mxu0  ;;  %v1673_v33 = vpop.f32.mrf.mxu1 }
 0x1b0   : > { %3449 = vst [vmem:[%s4138_s18 + $0xa8] sm:$0xff] %v3217_v30   ;;  %3481 = vst [vmem:[%s4138_s18 + $0x1a8] sm:$0xff] %v3377_v31   ;;  %v1794_v42 = vmax.f32 %v1416_v34, 0.0  ;;  %v1858_v43 = vmax.f32 %v1672_v35, 0.0 }
 0x1b1   : > { %v1418_v36 = vpop.f32.mrf.mxu0  ;;  %v1674_v37 = vpop.f32.mrf.mxu1 }
 0x1b2   : > { %v1419_v38 = vadd.f32 %v4121_v49, %v1418_v36  ;;  %v1675_v39 = vadd.f32 %v4121_v49, %v1674_v37 }
 0x1b3   : > { %v1420_v40 = vpop.f32.mrf.mxu0  ;;  %v1676_v41 = vpop.f32.mrf.mxu1 }
 0x1b4   : > { %v1795_v44 = vmax.f32 %v1419_v38, 0.0  ;;  %v1859_v45 = vmax.f32 %v1675_v39, 0.0 }
 0x1b5   : > { %v1423_v46 = vpop.f32.mrf.mxu0  ;;  %v1679_v47 = vpop.f32.mrf.mxu1 }
 0x1b6   : > { %v3222_v48 = vpack.c.bf16 %v1795_v44, %v1794_v42  ;;  %v3382_v50 = vpack.c.bf16 %v1859_v45, %v1858_v43  ;;  %v1424_v49 = vadd.f32 %v4309_v53, %v1423_v46  ;;  %v1680_v54 = vadd.f32 %v4309_v53, %v1679_v47 }
 0x1b7   : > { %v1425_v51 = vpop.f32.mrf.mxu0  ;;  %v1681_v52 = vpop.f32.mrf.mxu1 }
 0x1b8   : > { %3450 = vst [vmem:[%s4138_s18 + $0xb0] sm:$0xff] %v3222_v48   ;;  %3482 = vst [vmem:[%s4138_s18 + $0x1b0] sm:$0xff] %v3382_v50   ;;  %v1796_v61 = vmax.f32 %v1424_v49, 0.0  ;;  %v1860_v62 = vmax.f32 %v1680_v54, 0.0 }
 0x1b9   : > { %v1426_v55 = vpop.f32.mrf.mxu0  ;;  %v1682_v56 = vpop.f32.mrf.mxu1 }
 0x1ba   : > { %v1427_v57 = vadd.f32 %v4309_v53, %v1426_v55  ;;  %v1683_v58 = vadd.f32 %v4309_v53, %v1682_v56 }
 0x1bb   : > { %v1428_v59 = vpop.f32.mrf.mxu0  ;;  %v1684_v60 = vpop.f32.mrf.mxu1 }
 0x1bc   : > { %v1797_v63 = vmax.f32 %v1427_v57, 0.0  ;;  %v1861_v0 = vmax.f32 %v1683_v58, 0.0 }
 0x1bd   : > { %v1431_v1 = vpop.f32.mrf.mxu0  ;;  %v1687_v2 = vpop.f32.mrf.mxu1 }
 0x1be   : > { %v3227_v3 = vpack.c.bf16 %v1797_v63, %v1796_v61  ;;  %v3387_v4 = vpack.c.bf16 %v1861_v0, %v1860_v62  ;;  %v1432_v7 = vadd.f32 %v4309_v53, %v1431_v1  ;;  %v1688_v8 = vadd.f32 %v4309_v53, %v1687_v2 }
 0x1bf   : > { %v1433_v5 = vpop.f32.mrf.mxu0  ;;  %v1689_v6 = vpop.f32.mrf.mxu1 }
 0x1c0   : > { %3451 = vst [vmem:[%s4138_s18 + $0xb8] sm:$0xff] %v3227_v3   ;;  %3483 = vst [vmem:[%s4138_s18 + $0x1b8] sm:$0xff] %v3387_v4   ;;  %v1798_v15 = vmax.f32 %v1432_v7, 0.0  ;;  %v1862_v16 = vmax.f32 %v1688_v8, 0.0 }
 0x1c1   : > { %v1434_v9 = vpop.f32.mrf.mxu0  ;;  %v1690_v10 = vpop.f32.mrf.mxu1 }
 0x1c2   : > { %v1435_v11 = vadd.f32 %v4309_v53, %v1434_v9  ;;  %v1691_v12 = vadd.f32 %v4309_v53, %v1690_v10 }
 0x1c3   : > { %v1436_v13 = vpop.f32.mrf.mxu0  ;;  %v1692_v14 = vpop.f32.mrf.mxu1 }
 0x1c4   : > { %v1799_v17 = vmax.f32 %v1435_v11, 0.0  ;;  %v1863_v18 = vmax.f32 %v1691_v12, 0.0 }
 0x1c5   : > { %v1439_v19 = vpop.f32.mrf.mxu0  ;;  %v1695_v20 = vpop.f32.mrf.mxu1 }
 0x1c6   : > { %v3232_v21 = vpack.c.bf16 %v1799_v17, %v1798_v15  ;;  %v3392_v22 = vpack.c.bf16 %v1863_v18, %v1862_v16  ;;  %v1440_v25 = vadd.f32 %v4309_v53, %v1439_v19  ;;  %v1696_v26 = vadd.f32 %v4309_v53, %v1695_v20 }
 0x1c7   : > { %v1441_v23 = vpop.f32.mrf.mxu0  ;;  %v1697_v24 = vpop.f32.mrf.mxu1 }
 0x1c8   : > { %3452 = vst [vmem:[%s4138_s18 + $0xc0] sm:$0xff] %v3232_v21   ;;  %3484 = vst [vmem:[%s4138_s18 + $0x1c0] sm:$0xff] %v3392_v22   ;;  %v1800_v33 = vmax.f32 %v1440_v25, 0.0  ;;  %v1864_v34 = vmax.f32 %v1696_v26, 0.0 }
 0x1c9   : > { %v1442_v27 = vpop.f32.mrf.mxu0  ;;  %v1698_v28 = vpop.f32.mrf.mxu1 }
 0x1ca   : > { %v1443_v29 = vadd.f32 %v4309_v53, %v1442_v27  ;;  %v1699_v30 = vadd.f32 %v4309_v53, %v1698_v28 }
 0x1cb   : > { %v1444_v31 = vpop.f32.mrf.mxu0  ;;  %v1700_v32 = vpop.f32.mrf.mxu1 }
 0x1cc   : > { %v1801_v35 = vmax.f32 %v1443_v29, 0.0  ;;  %v1865_v36 = vmax.f32 %v1699_v30, 0.0 }
 0x1cd   : > { %v1447_v37 = vpop.f32.mrf.mxu0  ;;  %v1703_v38 = vpop.f32.mrf.mxu1 }
 0x1ce   : > { %v3237_v39 = vpack.c.bf16 %v1801_v35, %v1800_v33  ;;  %v3397_v40 = vpack.c.bf16 %v1865_v36, %v1864_v34  ;;  %v1448_v43 = vadd.f32 %v4309_v53, %v1447_v37  ;;  %v1704_v44 = vadd.f32 %v4309_v53, %v1703_v38 }
 0x1cf   : > { %v1449_v41 = vpop.f32.mrf.mxu0  ;;  %v1705_v42 = vpop.f32.mrf.mxu1 }
 0x1d0   : > { %3453 = vst [vmem:[%s4138_s18 + $0xc8] sm:$0xff] %v3237_v39   ;;  %3485 = vst [vmem:[%s4138_s18 + $0x1c8] sm:$0xff] %v3397_v40   ;;  %v1802_v52 = vmax.f32 %v1448_v43, 0.0  ;;  %v1866_v49 = vmax.f32 %v1704_v44, 0.0 }
 0x1d1   : > { %v1450_v45 = vpop.f32.mrf.mxu0  ;;  %v1706_v46 = vpop.f32.mrf.mxu1 }
 0x1d2   : > { %v1451_v47 = vadd.f32 %v4309_v53, %v1450_v45  ;;  %v1707_v48 = vadd.f32 %v4309_v53, %v1706_v46 }
 0x1d3   : > { %v1452_v50 = vpop.f32.mrf.mxu0  ;;  %v1708_v51 = vpop.f32.mrf.mxu1 }
 0x1d4   : > { %v1803_v54 = vmax.f32 %v1451_v47, 0.0  ;;  %v1867_v55 = vmax.f32 %v1707_v48, 0.0 }
 0x1d5   : > { %v1455_v56 = vpop.f32.mrf.mxu0  ;;  %v1711_v57 = vpop.f32.mrf.mxu1 }
 0x1d6   : > { %v3242_v58 = vpack.c.bf16 %v1803_v54, %v1802_v52  ;;  %v3402_v59 = vpack.c.bf16 %v1867_v55, %v1866_v49  ;;  %v1456_v62 = vadd.f32 %v4309_v53, %v1455_v56  ;;  %v1712_v63 = vadd.f32 %v4309_v53, %v1711_v57 }
 0x1d7   : > { %v1457_v60 = vpop.f32.mrf.mxu0  ;;  %v1713_v61 = vpop.f32.mrf.mxu1 }
 0x1d8   : > { %3454 = vst [vmem:[%s4138_s18 + $0xd0] sm:$0xff] %v3242_v58   ;;  %3486 = vst [vmem:[%s4138_s18 + $0x1d0] sm:$0xff] %v3402_v59   ;;  %v1804_v6 = vmax.f32 %v1456_v62, 0.0  ;;  %v1868_v7 = vmax.f32 %v1712_v63, 0.0 }
 0x1d9   : > { %v1458_v0 = vpop.f32.mrf.mxu0  ;;  %v1714_v1 = vpop.f32.mrf.mxu1 }
 0x1da   : > { %v1459_v2 = vadd.f32 %v4309_v53, %v1458_v0  ;;  %v1715_v3 = vadd.f32 %v4309_v53, %v1714_v1 }
 0x1db   : > { %v1460_v4 = vpop.f32.mrf.mxu0  ;;  %v1716_v5 = vpop.f32.mrf.mxu1 }
 0x1dc   : > { %v1805_v8 = vmax.f32 %v1459_v2, 0.0  ;;  %v1869_v9 = vmax.f32 %v1715_v3, 0.0 }
 0x1dd   : > { %v1463_v10 = vpop.f32.mrf.mxu0  ;;  %v1719_v11 = vpop.f32.mrf.mxu1 }
 0x1de   : > { %v3247_v12 = vpack.c.bf16 %v1805_v8, %v1804_v6  ;;  %v3407_v13 = vpack.c.bf16 %v1869_v9, %v1868_v7  ;;  %v1464_v16 = vadd.f32 %v4309_v53, %v1463_v10  ;;  %v1720_v17 = vadd.f32 %v4309_v53, %v1719_v11 }
 0x1df   : > { %v1465_v14 = vpop.f32.mrf.mxu0  ;;  %v1721_v15 = vpop.f32.mrf.mxu1 }
 0x1e0   : > { %3455 = vst [vmem:[%s4138_s18 + $0xd8] sm:$0xff] %v3247_v12   ;;  %3487 = vst [vmem:[%s4138_s18 + $0x1d8] sm:$0xff] %v3407_v13   ;;  %v1806_v24 = vmax.f32 %v1464_v16, 0.0  ;;  %v1870_v25 = vmax.f32 %v1720_v17, 0.0 }
 0x1e1   : > { %v1466_v18 = vpop.f32.mrf.mxu0  ;;  %v1722_v19 = vpop.f32.mrf.mxu1 }
 0x1e2   : > { %v1467_v20 = vadd.f32 %v4309_v53, %v1466_v18  ;;  %v1723_v21 = vadd.f32 %v4309_v53, %v1722_v19 }
 0x1e3   : > { %v1468_v22 = vpop.f32.mrf.mxu0  ;;  %v1724_v23 = vpop.f32.mrf.mxu1 }
 0x1e4   : > { %v1807_v26 = vmax.f32 %v1467_v20, 0.0  ;;  %v1871_v27 = vmax.f32 %v1723_v21, 0.0 }
 0x1e5   : > { %v1471_v28 = vpop.f32.mrf.mxu0  ;;  %v1727_v29 = vpop.f32.mrf.mxu1 }
 0x1e6   : > { %v3252_v30 = vpack.c.bf16 %v1807_v26, %v1806_v24  ;;  %v3412_v31 = vpack.c.bf16 %v1871_v27, %v1870_v25  ;;  %v1472_v34 = vadd.f32 %v4309_v53, %v1471_v28  ;;  %v1728_v35 = vadd.f32 %v4309_v53, %v1727_v29 }
 0x1e7   : > { %v1473_v32 = vpop.f32.mrf.mxu0  ;;  %v1729_v33 = vpop.f32.mrf.mxu1 }
 0x1e8   : > { %3456 = vst [vmem:[%s4138_s18 + $0xe0] sm:$0xff] %v3252_v30   ;;  %3488 = vst [vmem:[%s4138_s18 + $0x1e0] sm:$0xff] %v3412_v31   ;;  %v1808_v42 = vmax.f32 %v1472_v34, 0.0  ;;  %v1872_v43 = vmax.f32 %v1728_v35, 0.0 }
 0x1e9   : > { %v1474_v36 = vpop.f32.mrf.mxu0  ;;  %v1730_v37 = vpop.f32.mrf.mxu1 }
 0x1ea   : > { %v1475_v38 = vadd.f32 %v4309_v53, %v1474_v36  ;;  %v1731_v39 = vadd.f32 %v4309_v53, %v1730_v37 }
 0x1eb   : > { %v1476_v40 = vpop.f32.mrf.mxu0  ;;  %v1732_v41 = vpop.f32.mrf.mxu1 }
 0x1ec   : > { %v1809_v44 = vmax.f32 %v1475_v38, 0.0  ;;  %v1873_v45 = vmax.f32 %v1731_v39, 0.0 }
 0x1ed   : > { %v1479_v46 = vpop.f32.mrf.mxu0  ;;  %v1735_v47 = vpop.f32.mrf.mxu1 }
 0x1ee   : > { %v3257_v48 = vpack.c.bf16 %v1809_v44, %v1808_v42  ;;  %v3417_v50 = vpack.c.bf16 %v1873_v45, %v1872_v43  ;;  %v1480_v49 = vadd.f32 %v4309_v53, %v1479_v46  ;;  %v1736_v54 = vadd.f32 %v4309_v53, %v1735_v47 }
 0x1ef   : > { %v1481_v51 = vpop.f32.mrf.mxu0  ;;  %v1737_v52 = vpop.f32.mrf.mxu1 }
 0x1f0   : > { %3457 = vst [vmem:[%s4138_s18 + $0xe8] sm:$0xff] %v3257_v48   ;;  %3489 = vst [vmem:[%s4138_s18 + $0x1e8] sm:$0xff] %v3417_v50   ;;  %v1810_v61 = vmax.f32 %v1480_v49, 0.0  ;;  %v1874_v62 = vmax.f32 %v1736_v54, 0.0 }
 0x1f1   : > { %v1482_v55 = vpop.f32.mrf.mxu0  ;;  %v1738_v56 = vpop.f32.mrf.mxu1 }
 0x1f2   : > { %v1483_v57 = vadd.f32 %v4309_v53, %v1482_v55  ;;  %v1739_v58 = vadd.f32 %v4309_v53, %v1738_v56 }
 0x1f3   : > { %v1484_v59 = vpop.f32.mrf.mxu0  ;;  %v1740_v60 = vpop.f32.mrf.mxu1 }
 0x1f4   : > { %v1811_v63 = vmax.f32 %v1483_v57, 0.0  ;;  %v1875_v0 = vmax.f32 %v1739_v58, 0.0 }
 0x1f5   : > { %v1487_v1 = vpop.f32.mrf.mxu0  ;;  %v1743_v2 = vpop.f32.mrf.mxu1 }
 0x1f6   : > { %v3262_v3 = vpack.c.bf16 %v1811_v63, %v1810_v61  ;;  %v3422_v4 = vpack.c.bf16 %v1875_v0, %v1874_v62  ;;  %v1488_v7 = vadd.f32 %v4309_v53, %v1487_v1  ;;  %v1744_v8 = vadd.f32 %v4309_v53, %v1743_v2 }
 0x1f7   : > { %v1489_v5 = vpop.f32.mrf.mxu0  ;;  %v1745_v6 = vpop.f32.mrf.mxu1 }
 0x1f8   : > { %3458 = vst [vmem:[%s4138_s18 + $0xf0] sm:$0xff] %v3262_v3   ;;  %3490 = vst [vmem:[%s4138_s18 + $0x1f0] sm:$0xff] %v3422_v4   ;;  %v1812_v15 = vmax.f32 %v1488_v7, 0.0  ;;  %v1876_v16 = vmax.f32 %v1744_v8, 0.0 }
 0x1f9   : > { %v1490_v9 = vpop.f32.mrf.mxu0  ;;  %v1746_v10 = vpop.f32.mrf.mxu1 }
 0x1fa   : > { %v1491_v11 = vadd.f32 %v4309_v53, %v1490_v9  ;;  %v1747_v12 = vadd.f32 %v4309_v53, %v1746_v10 }
 0x1fb   : > { %v1492_v13 = vpop.f32.mrf.mxu0  ;;  %v1748_v14 = vpop.f32.mrf.mxu1 }
 0x1fc   : > { %v1813_v17 = vmax.f32 %v1491_v11, 0.0  ;;  %v1877_v18 = vmax.f32 %v1747_v12, 0.0 }
 0x1fe   : > { %v3267_v53 = vpack.c.bf16 %v1813_v17, %v1812_v15  ;;  %v3427_v19 = vpack.c.bf16 %v1877_v18, %v1876_v16 }
 0x200   : > { %3459 = vst [vmem:[%s4138_s18 + $0xf8] sm:$0xff] %v3267_v53   ;;  %3491 = vst [vmem:[%s4138_s18 + $0x1f8] sm:$0xff] %v3427_v19  }
 0x201   : > { %3786 = shalt.err (!%p3783_p5)
}
 0x202   : > { %s3787_s6 = scalar_lea.hbm %s4368_s28, 8192  ;;  %s3791_s10 = scalar_lea.hbm %s4424_s3, 16384 }
 0x203   : > { %p3788_p6 = scmp.ne.s32.totalorder %s4368_s28, %s3787_s6  ;;  %p3792_p10 = scmp.lt.s32.totalorder %s4368_s28, %s4424_s3 }
 0x204   : > { %p3793_p11 = scmp.lt.s32.totalorder %s3791_s10, %s3787_s6 }
 0x205   : > { %p3789_p7 = pnand %p3788_p6, %p3915_p4 }
 0x206   : > { %p3794_p12 = por %p3793_p11, %p3792_p10 }
 0x207   : > { %p3790_p9 = pneg %p3789_p7 }
 0x209   : > { %p3795_p13 = pnand %p3794_p12, %p3790_p9 }
 0x20b   : > { %3798 = shalt.err (!%p3795_p13)
}
 0x20c   : > { %s3853_s9 = smov 64   ;;  %s3854_s19 = smov 4  }
 0x20d   : > { %3512 = dma.vmem_to_hbm [thread:$0]  (%p3915_p4), %s4370_s23, 8192, %s4368_s28, %s4376_s15, %s3853_s9, %s3853_s9, %s3854_s19  }
 0x20e PF: > { %p3518_p0 = scmp.ge.s32.totalorder %s3849_s17, 2  ;;  %s2548_s21 = sand.u32 1, %s3829_s12  }
 0x20f   : > { %s2549_s26 = scalar_lea.sflag [#allocation3], %s2548_s21 }
 0x210   : > { %p3515_p1 = pnand %p3518_p0, %p3922_p8 }
 0x212   : > { %p3516_p2 = pneg %p3515_p1 }
 0x214   : > { %3824 = dma.done.wait (%p3516_p2), %s2549_s26, 8192  }
 0x215   : > { %3826 = vsyncadd (%p3516_p2), %s2549_s26, 4294959104  ;;  %s16_s17 = sadd.s32 1, %s3849_s17   ;;  %s4427_s12 = smov %s3833_s13 }
 0x216   : > { %p13_p3 = scmp.ge.s32.totalorder %s16_s17, 4   ;;  %s4428_s13 = smov %s3837_s14 }
 0x217   : > { %s4429_s14 = smov %s3928_s25  ;;  %s4430_s15 = smov %s3845_s16 }
 0x218   : > { %s4431_s16 = smov %s4433_s20  ;;  %15 = sbr.rel (!%p13_p3) target bundleno = 4 (0x4), region = 73 }
 0x21d   :  { %2554 = vsyncpa [#allocation3], 1 }
 0x21e   :  { %2556 = vsyncpa [#allocation3 + $0x1], 1 }

</bundles_post_ra>
